<compile_context>
chip_gen: v7x
topology: tpu7x:2x2x1
jax: 0.10.0
libtpu: 0.0.40
codegen_flags: <defaults>
</compile_context>

<pallas_src>
import jax
import jax.numpy as jnp
from jax import lax
from jax.experimental import pallas as pl
from jax.experimental.pallas import tpu as pltpu

IN_F = 6400
HID = 512
HC = HID // 2          # per-core hidden slice (2 TensorCores on v7x)
OUT = 43
OUT_PAD = 128          # fc3 out dim padded to one full lane group
P_DROP = 0.4
BN_EPS = 1e-5
TK = 3200              # K-tile for the fc2 reduction (6400 / 3200 = 2 steps)


def bigh_kernel(x_ref, w1_ref, b1_ref, g_ref, beta_ref, w2_ref, mask_ref,
                o_ref, acc_ref):
    """Grid = (hidden-half c : parallel, K-step k : arbitrary reduction)."""
    k = pl.program_id(1)

    # ---- fc2 matmul, accumulated over the K grid axis (bias folded in) ----
    @pl.when(k == 0)
    def _():
        acc_ref[...] = jnp.broadcast_to(b1_ref[...], acc_ref.shape)

    start = pl.multiple_of(k * TK, TK)
    x_blk = x_ref[:, pl.ds(start, TK)]                 # (N, TK) bf16
    acc_ref[...] += jnp.dot(x_blk, w1_ref[0],          # (TK, HC) bf16
                            preferred_element_type=jnp.float32)

    # ---- epilogue on the last K step: BN -> ReLU -> dropout -> fc3 half ----
    @pl.when(k == pl.num_programs(1) - 1)
    def _():
        h = acc_ref[...]                               # (N, HC) f32

        # BatchNorm1d, training mode: batch mean / biased batch variance,
        # applied as a fused per-feature scale/shift.  Exact under the HID
        # split since BN is per-feature.
        mean = jnp.mean(h, axis=0, keepdims=True)
        var = jnp.mean((h - mean) ** 2, axis=0, keepdims=True)
        scale = g_ref[...] * lax.rsqrt(var + BN_EPS)
        hn = (h - mean) * scale + beta_ref[...]

        # ReLU + dropout (mask already scaled by 1/(1-p)).
        a = jnp.maximum(hn, 0.0) * mask_ref[...]

        # Partial fc3 for this half of the hidden features (lane-padded to
        # 128 columns -> unmasked vector stores).
        o_ref[0] = jnp.dot(a, w2_ref[...],
                           preferred_element_type=jnp.float32
                           ).astype(o_ref.dtype)


def bigh_forward(x_bf16, w1_split, b1, gamma, beta, w2_t_pad, b2, mask):
    """x_bf16:(N,6400) bf16, w1_split:(2,6400,256) bf16, w2_t_pad:(512,128) f32."""
    N = x_bf16.shape[0]
    n_k = IN_F // TK

    partial = pl.pallas_call(
        bigh_kernel,
        out_shape=jax.ShapeDtypeStruct((2, N, OUT_PAD), jnp.float32),
        grid_spec=pltpu.PrefetchScalarGridSpec(
            num_scalar_prefetch=0,
            grid=(2, n_k),
            in_specs=[
                pl.BlockSpec((N, IN_F), lambda c, k: (0, 0)),       # x (full)
                pl.BlockSpec((1, TK, HC), lambda c, k: (c, k, 0)),  # W1 half
                pl.BlockSpec((1, HC), lambda c, k: (0, c)),         # b1 half
                pl.BlockSpec((1, HC), lambda c, k: (0, c)),         # gamma half
                pl.BlockSpec((1, HC), lambda c, k: (0, c)),         # beta half
                pl.BlockSpec((HC, OUT_PAD), lambda c, k: (c, 0)),   # W2 half (padded)
                pl.BlockSpec((N, HC), lambda c, k: (0, c)),         # drop mask
            ],
            out_specs=pl.BlockSpec((1, N, OUT_PAD), lambda c, k: (c, 0, 0)),
            scratch_shapes=[pltpu.VMEM((N, HC), jnp.float32)],      # fc2 acc
        ),
        compiler_params=pltpu.CompilerParams(
            dimension_semantics=("parallel", "arbitrary")),
    )(x_bf16, w1_split, b1, gamma, beta, w2_t_pad, mask)

    # Combine the two per-core partial fc3 outputs, drop the lane padding,
    # and add the fc3 bias (tiny XLA ops).
    return (partial[0] + partial[1])[:, :OUT] + b2


def prepare_weights(w1, w2):
    """One-time layout prep: transpose nn.Linear weights to (in, out),
    cast the big fc2 weight to bf16 and split it into contiguous HID halves,
    zero-pad the fc3 weight to 128 output lanes."""
    w1_t = w1.T                                              # (6400, 512)
    w1_split = jnp.stack([w1_t[:, :HC], w1_t[:, HC:]], axis=0
                         ).astype(jnp.bfloat16)              # (2, 6400, 256)
    w2_t_pad = jnp.pad(w2.T.astype(jnp.float32),
                       ((0, 0), (0, OUT_PAD - OUT)))         # (512, 128)
    return w1_split, w2_t_pad


if __name__ == "__main__":
    key = jax.random.PRNGKey(0)
    kx, kw1, kw2, kd = jax.random.split(key, 4)

    # N must be a multiple of 8 (f32 sublane) for the block shapes used here.
    N = 8
    x = jax.random.normal(kx, (N, IN_F), dtype=jnp.float32)

    # Parameters initialized as in BigH._initialize_weights():
    #   Linear.weight ~ N(0, 0.01), Linear.bias = 0
    #   BatchNorm1d.weight = 1, BatchNorm1d.bias = 0
    w1 = jax.random.normal(kw1, (HID, IN_F), dtype=jnp.float32) * 0.01
    b1 = jnp.zeros((1, HID), jnp.float32)
    gamma = jnp.ones((1, HID), jnp.float32)
    beta = jnp.zeros((1, HID), jnp.float32)
    w2 = jax.random.normal(kw2, (OUT, HID), dtype=jnp.float32) * 0.01
    b2 = jnp.zeros((1, OUT), jnp.float32)

    # Dropout keep-mask (training mode), pre-scaled by 1/(1-p).
    # TODO(synk): an in-kernel pltpu.prng_random_bits mask would avoid this
    # tiny stream, but the stateful TPU PRNG has no interpret/CPU lowering.
    u = jax.random.uniform(kd, (N, HID), dtype=jnp.float32)
    mask = (u >= P_DROP).astype(jnp.float32) * (1.0 / (1.0 - P_DROP))

    w1_split, w2_t_pad = prepare_weights(w1, w2)
    x_bf16 = x.astype(jnp.bfloat16)

    fwd = jax.jit(bigh_forward)
    out = fwd(x_bf16, w1_split, b1, gamma, beta, w2_t_pad, b2, mask)
    jax.block_until_ready(out)
    assert out.shape == (N, OUT)
    print("KERNEL_OK")
</pallas_src>

<mosaic_0001>
module attributes {stable_mosaic.version = 11 : i64} {
  func.func @bigh_kernel(%arg0: i32, %arg1: i32, %arg2: memref<8x6400xbf16, #tpu.memory_space<vmem>>, %arg3: memref<1x3200x256xbf16, #tpu.memory_space<vmem>>, %arg4: memref<1x256xf32, #tpu.memory_space<vmem>>, %arg5: memref<1x256xf32, #tpu.memory_space<vmem>>, %arg6: memref<1x256xf32, #tpu.memory_space<vmem>>, %arg7: memref<256x128xf32, #tpu.memory_space<vmem>>, %arg8: memref<8x256xf32, #tpu.memory_space<vmem>>, %arg9: memref<1x8x128xf32, #tpu.memory_space<vmem>>, %arg10: memref<8x256xf32, #tpu.memory_space<vmem>>) attributes {dimension_semantics = [#tpu.dimension_semantics<parallel>, #tpu.dimension_semantics<arbitrary>], iteration_bounds = array<i64: 2, 2>, scalar_prefetch = 0 : i64, scratch_operands = 1 : i64, tpu.core_type = #tpu.core_type<tc>, window_params = [{pipeline_mode = #tpu.pipeline_mode<synchronous>, transform_indices = @transform_0, window_bounds = array<i64: 8, 6400>}, {transform_indices = @transform_1, window_bounds = array<i64: 1, 3200, 256>}, {transform_indices = @transform_2, window_bounds = array<i64: 1, 256>}, {transform_indices = @transform_3, window_bounds = array<i64: 1, 256>}, {transform_indices = @transform_4, window_bounds = array<i64: 1, 256>}, {transform_indices = @transform_5, window_bounds = array<i64: 256, 128>}, {transform_indices = @transform_6, window_bounds = array<i64: 8, 256>}, {transform_indices = @transform_7, window_bounds = array<i64: 1, 8, 128>}]} {
    %c0_i32 = arith.constant 0 : i32
    %0 = arith.cmpi eq, %arg1, %c0_i32 : i32
    %1 = arith.extui %0 : i1 to i32
    %c0_i32_0 = arith.constant 0 : i32
    %2 = arith.cmpi ne, %1, %c0_i32_0 : i32
    scf.if %2 {
      %c0_9 = arith.constant 0 : index
      %c0_10 = arith.constant 0 : index
      %16 = vector.load %arg4[%c0_9, %c0_10] : memref<1x256xf32, #tpu.memory_space<vmem>>, vector<1x256xf32>
      %17 = vector.shape_cast %16 : vector<1x256xf32> to vector<1x256xf32>
      %18 = vector.broadcast %17 : vector<1x256xf32> to vector<8x256xf32>
      %c0_11 = arith.constant 0 : index
      %c0_12 = arith.constant 0 : index
      %19 = vector.load %arg10[%c0_11, %c0_12] : memref<8x256xf32, #tpu.memory_space<vmem>>, vector<8x256xf32>
      tpu.vector_store %arg10[%c0_11, %c0_12], %18 {strides = array<i32>} : memref<8x256xf32, #tpu.memory_space<vmem>>, vector<8x256xf32>,
    } else {
    }
    %c3200_i32 = arith.constant 3200 : i32
    %3 = arith.muli %arg1, %c3200_i32 : i32
    %4 = tpu.assume_multiple %3, 3200 : i32
    %c0 = arith.constant 0 : index
    %5 = arith.index_cast %4 : i32 to index
    %6 = vector.load %arg2[%c0, %5] : memref<8x6400xbf16, #tpu.memory_space<vmem>>, vector<8x3200xbf16>
    %c0_1 = arith.constant 0 : index
    %c0_2 = arith.constant 0 : index
    %7 = vector.load %arg10[%c0_1, %c0_2] : memref<8x256xf32, #tpu.memory_space<vmem>>, vector<8x256xf32>
    %c0_3 = arith.constant 0 : index
    %c0_4 = arith.constant 0 : index
    %c0_5 = arith.constant 0 : index
    %8 = vector.load %arg3[%c0_3, %c0_4, %c0_5] : memref<1x3200x256xbf16, #tpu.memory_space<vmem>>, vector<1x3200x256xbf16>
    %9 = vector.shape_cast %8 : vector<1x3200x256xbf16> to vector<3200x256xbf16>
    %cst = arith.constant dense<0.000000e+00> : vector<8x256xf32>
    %10 = tpu.matmul %6, %9, %cst {dimension_numbers = #tpu.dot_dimension_numbers<[1], [0], [0], [1], [0, 0, 1, 1], [], []>} : vector<8x3200xbf16>, vector<3200x256xbf16>, vector<8x256xf32> -> vector<8x256xf32>
    %11 = arith.addf %7, %10 : vector<8x256xf32>
    %c0_6 = arith.constant 0 : index
    %c0_7 = arith.constant 0 : index
    %12 = vector.load %arg10[%c0_6, %c0_7] : memref<8x256xf32, #tpu.memory_space<vmem>>, vector<8x256xf32>
    tpu.vector_store %arg10[%c0_6, %c0_7], %11 {strides = array<i32>} : memref<8x256xf32, #tpu.memory_space<vmem>>, vector<8x256xf32>,
    %c1_i32 = arith.constant 1 : i32
    %13 = arith.cmpi eq, %arg1, %c1_i32 : i32
    %14 = arith.extui %13 : i1 to i32
    %c0_i32_8 = arith.constant 0 : i32
    %15 = arith.cmpi ne, %14, %c0_i32_8 : i32
    scf.if %15 {
      %c0_9 = arith.constant 0 : index
      %c0_10 = arith.constant 0 : index
      %16 = vector.load %arg10[%c0_9, %c0_10] : memref<8x256xf32, #tpu.memory_space<vmem>>, vector<8x256xf32>
      %cst_11 = arith.constant dense<0.000000e+00> : vector<256xf32>
      %17 = vector.multi_reduction <add>, %16, %cst_11 [0] : vector<8x256xf32> to vector<256xf32>
      %18 = vector.shape_cast %17 : vector<256xf32> to vector<1x256xf32>
      %cst_12 = arith.constant 8.000000e+00 : f32
      %19 = vector.broadcast %cst_12 : f32 to vector<1x256xf32>
      %20 = arith.divf %18, %19 : vector<1x256xf32>
      %21 = vector.broadcast %20 : vector<1x256xf32> to vector<8x256xf32>
      %22 = arith.subf %16, %21 : vector<8x256xf32>
      %23 = arith.mulf %22, %22 : vector<8x256xf32>
      %cst_13 = arith.constant dense<0.000000e+00> : vector<256xf32>
      %24 = vector.multi_reduction <add>, %23, %cst_13 [0] : vector<8x256xf32> to vector<256xf32>
      %25 = vector.shape_cast %24 : vector<256xf32> to vector<1x256xf32>
      %cst_14 = arith.constant 8.000000e+00 : f32
      %26 = vector.broadcast %cst_14 : f32 to vector<1x256xf32>
      %27 = arith.divf %25, %26 : vector<1x256xf32>
      %c0_15 = arith.constant 0 : index
      %c0_16 = arith.constant 0 : index
      %28 = vector.load %arg5[%c0_15, %c0_16] : memref<1x256xf32, #tpu.memory_space<vmem>>, vector<1x256xf32>
      %cst_17 = arith.constant 9.99999974E-6 : f32
      %29 = vector.broadcast %cst_17 : f32 to vector<1x256xf32>
      %30 = arith.addf %27, %29 : vector<1x256xf32>
      %31 = math.rsqrt %30 : vector<1x256xf32>
      %32 = arith.mulf %28, %31 : vector<1x256xf32>
      %33 = vector.broadcast %20 : vector<1x256xf32> to vector<8x256xf32>
      %34 = arith.subf %16, %33 : vector<8x256xf32>
      %35 = vector.broadcast %32 : vector<1x256xf32> to vector<8x256xf32>
      %36 = arith.mulf %34, %35 : vector<8x256xf32>
      %c0_18 = arith.constant 0 : index
      %c0_19 = arith.constant 0 : index
      %37 = vector.load %arg6[%c0_18, %c0_19] : memref<1x256xf32, #tpu.memory_space<vmem>>, vector<1x256xf32>
      %38 = vector.broadcast %37 : vector<1x256xf32> to vector<8x256xf32>
      %39 = arith.addf %36, %38 : vector<8x256xf32>
      %cst_20 = arith.constant 0.000000e+00 : f32
      %40 = vector.broadcast %cst_20 : f32 to vector<8x256xf32>
      %41 = arith.maximumf %39, %40 : vector<8x256xf32>
      %c0_21 = arith.constant 0 : index
      %c0_22 = arith.constant 0 : index
      %42 = vector.load %arg8[%c0_21, %c0_22] : memref<8x256xf32, #tpu.memory_space<vmem>>, vector<8x256xf32>
      %43 = arith.mulf %41, %42 : vector<8x256xf32>
      %c0_23 = arith.constant 0 : index
      %c0_24 = arith.constant 0 : index
      %44 = vector.load %arg7[%c0_23, %c0_24] : memref<256x128xf32, #tpu.memory_space<vmem>>, vector<256x128xf32>
      %cst_25 = arith.constant dense<0.000000e+00> : vector<8x128xf32>
      %45 = tpu.matmul %43, %44, %cst_25 {dimension_numbers = #tpu.dot_dimension_numbers<[1], [0], [0], [1], [0, 0, 1, 1], [], []>} : vector<8x256xf32>, vector<256x128xf32>, vector<8x128xf32> -> vector<8x128xf32>
      %c0_26 = arith.constant 0 : index
      %c0_27 = arith.constant 0 : index
      %c0_28 = arith.constant 0 : index
      %46 = vector.load %arg9[%c0_26, %c0_27, %c0_28] : memref<1x8x128xf32, #tpu.memory_space<vmem>>, vector<1x8x128xf32>
      %47 = vector.shape_cast %46 : vector<1x8x128xf32> to vector<8x128xf32>
      %48 = vector.shape_cast %45 : vector<8x128xf32> to vector<1x8x128xf32>
      tpu.vector_store %arg9[%c0_26, %c0_27, %c0_28], %48 {strides = array<i32>} : memref<1x8x128xf32, #tpu.memory_space<vmem>>, vector<1x8x128xf32>,
    } else {
    }
    return
  }
  func.func @transform_0(%arg0: i32, %arg1: i32) -> (i32, i32) {
    %c0_i32 = arith.constant 0 : i32
    %c0_i32_0 = arith.constant 0 : i32
    %c0_i32_1 = arith.constant 0 : i32
    return %c0_i32, %c0_i32_0 : i32, i32
  }
  func.func @transform_1(%arg0: i32, %arg1: i32) -> (i32, i32, i32) {
    %c0_i32 = arith.constant 0 : i32
    %c0_i32_0 = arith.constant 0 : i32
    return %arg0, %arg1, %c0_i32 : i32, i32, i32
  }
  func.func @transform_2(%arg0: i32, %arg1: i32) -> (i32, i32) {
    %c0_i32 = arith.constant 0 : i32
    %c0_i32_0 = arith.constant 0 : i32
    return %c0_i32, %arg0 : i32, i32
  }
  func.func @transform_3(%arg0: i32, %arg1: i32) -> (i32, i32) {
    %c0_i32 = arith.constant 0 : i32
    %c0_i32_0 = arith.constant 0 : i32
    return %c0_i32, %arg0 : i32, i32
  }
  func.func @transform_4(%arg0: i32, %arg1: i32) -> (i32, i32) {
    %c0_i32 = arith.constant 0 : i32
    %c0_i32_0 = arith.constant 0 : i32
    return %c0_i32, %arg0 : i32, i32
  }
  func.func @transform_5(%arg0: i32, %arg1: i32) -> (i32, i32) {
    %c0_i32 = arith.constant 0 : i32
    %c0_i32_0 = arith.constant 0 : i32
    return %arg0, %c0_i32 : i32, i32
  }
  func.func @transform_6(%arg0: i32, %arg1: i32) -> (i32, i32) {
    %c0_i32 = arith.constant 0 : i32
    %c0_i32_0 = arith.constant 0 : i32
    return %c0_i32, %arg0 : i32, i32
  }
  func.func @transform_7(%arg0: i32, %arg1: i32) -> (i32, i32, i32) {
    %c0_i32 = arith.constant 0 : i32
    %c0_i32_0 = arith.constant 0 : i32
    %c0_i32_1 = arith.constant 0 : i32
    return %arg0, %c0_i32, %c0_i32_0 : i32, i32, i32
  }
}

</mosaic_0001>

<bundles_post_ra>
// kernel: bigh_forward.1
= control target key start
LH: loop header
LB: loop body
LE: loop exit
PB: predicated region body
PF: predicated region fallthrough
CT: control target
= control target key end

     0   :  { %s6627_s0 = inlined_call_operand.hbm [shape: bf16[8,6400], index: 0, kind: input, shape index: {}]   ;;  %s6628_s1 = inlined_call_operand.hbm [shape: bf16[2,6400,256], index: 1, kind: input, shape index: {}]   ;;  %s6629_s2 = inlined_call_operand.hbm [shape: f32[1,512], index: 2, kind: input, shape index: {}]   ;;  %s6630_s3 = inlined_call_operand.hbm [shape: f32[1,512], index: 3, kind: input, shape index: {}]   ;;  %s6631_s4 = inlined_call_operand.hbm [shape: f32[1,512], index: 4, kind: input, shape index: {}]   ;;  %s6632_s5 = inlined_call_operand.hbm [shape: f32[512,128], index: 5, kind: input, shape index: {}]   ;;  %s6633_s6 = inlined_call_operand.hbm [shape: f32[8,512], index: 6, kind: input, shape index: {}]   ;;  %s6634_s7 = inlined_call_operand.vmem [shape: f32[2,8,128], index: 7, kind: output, shape index: {}]  }
   0x1   :  { %6659 = sst [smem:[#allocation28_spill]] %s6628_s1 }
   0x2   :  { %6660 = sst [smem:[#allocation29_spill]] %s6630_s3 }
   0x3   :  { %6661 = sst [smem:[#allocation30_spill]] %s6632_s5 }
   0x4   :  { %6662 = sst [smem:[#allocation31_spill]] %s6634_s7 }
   0x5   :  { %12 = vsyncpa [#allocation4], 0 }
   0x6   :  { %13 = vsyncpa [#allocation6], 0 }
   0x7   :  { %15 = vsyncpa [#allocation6 + $0x1], 0 }
   0x8   :  { %16 = vsyncpa [#allocation9], 0 }
   0x9   :  { %18 = vsyncpa [#allocation9 + $0x1], 0 }
   0xa   :  { %19 = vsyncpa [#allocation12], 0 }
   0xb   :  { %21 = vsyncpa [#allocation12 + $0x1], 0  ;;  %s5645_s24 = smov 0   ;;  %s5647_s25 = smov 0  }
   0xc   :  { %s5649_s26 = smov 0   ;;  %s5651_s27 = smov 0  }
   0xd   :  { %s5653_s28 = smov 0   ;;  %s5655_s29 = smov 0  }
   0xe   :  { %s5657_s30 = smov 0   ;;  %s5659_s8 = smov 0  }
   0xf   :  { %s5661_s9 = smov 0   ;;  %s5663_s10 = smov 0  }
  0x10   :  { %s5665_s11 = smov 0  }
  0x11 LB: > { %6663 = sst [smem:[#allocation19_spill]] %s5560_s26  ;;  %s36_s12 = sadd.s32 1, %s5584_s9  ;;  %s5592_s11 = sphi %s5665_s11, %s27_s11   ;;  %s5588_s10 = sphi %s5663_s10, %s6718_s10   ;;  %s5584_s9 = sphi %s5661_s9, %s6711_s9   ;;  %s5580_s8 = sphi %s5659_s8, %s6717_s8   ;;  %s5576_s30 = sphi %s5657_s30, %s6710_s30   ;;  %s5572_s29 = sphi %s5655_s29, %s6709_s29   ;;  %s5568_s28 = sphi %s5653_s28, %s6716_s28   ;;  %s5564_s27 = sphi %s5651_s27, %s6715_s27   ;;  %s5560_s26 = sphi %s5649_s26, %s6707_s26   ;;  %s5556_s25 = sphi %s5647_s25, %s6714_s25   ;;  %s5552_s24 = sphi %s5645_s24, %s6713_s24  }
  0x12   : > { %6664 = sst [smem:[#allocation20_spill]] %s5572_s29  ;;  %s39_s13 = sadd.s32 1, %s5588_s10 }
  0x13   : > { %6665 = sst [smem:[#allocation21_spill]] %s5576_s30  ;;  %p37_p0 = scmp.ge.s32.totalorder %s36_s12, 2 }
  0x14   : > { %6666 = sst [smem:[#allocation22_spill]] %s5580_s8  ;;  %s69_s14 = sadd.s32 1, %s5572_s29 }
  0x15   : > { %6667 = sst [smem:[#allocation23_spill]] %s5584_s9  ;;  %p76_p1 = scmp.ne.s32.totalorder %s5572_s29, %s5568_s28 }
  0x16   : > { %p6640_p2 = scmp.eq.s32.totalorder %s5592_s11, 0  ;;  %s6720_s12 = smov (%p37_p0, %s36_s12), 0 }
  0x17   : > { %6668 = sst [smem:[#allocation24_spill]] %s6720_s12  ;;  %s6722_s13 = smov (!%p37_p0, %s39_s13), %s5588_s10 }
  0x18   : > { %s65_s15 = ssub.s32 %s5584_s9, %s6720_s12  ;;  %p5713_p3 = por %p6640_p2, %p76_p1 }
  0x19   : > { %p41_p4 = scmp.ge.s32.totalorder %s6722_s13, 2  ;;  %p6639_p5 = scmp.lt.s32.totalorder %s5592_s11, 4 }
  0x1a   : > { %s5719_s17 = sand.u32 1, %s5592_s11   ;;  %s275_s18 = sand.u32 1, %s5572_s29  }
  0x1b   : > { %s6724_s13 = smov (%p41_p4, %s6722_s13), 0  ;;  %s4511_s20 = smul.u32 3200, %s275_s18 }
  0x1c   : > { %6670 = sst [smem:[#allocation25_spill]] %s6724_s13  ;;  %s5726_s19 = ssub.s32 %s5588_s10, %s6724_s13 }
  0x1d   : > { %s66_s21 = sor.u32 %s65_s15, %s5726_s19  ;;  %p93_p6 = scmp.eq.s32.totalorder %s5726_s19, 0 }
  0x1e   : > { %p67_p7 = scmp.eq.s32.totalorder %s66_s21, 0  ;;  %s4438_s22 = smul.u32 800, %s5584_s9 }
  0x1f   : > { %s277_s23 = scalar_lea.vmem [#allocation5], %s4511_s20  ;;  %s4512_s7 = smul.u32 1600, %s5588_s10 }
  0x20   : > { %s287_s12 = sshll.u32 %s277_s23, 4  ;;  %p5741_p8 = pnand %p6639_p5, %p5713_p3  ;;  %s5735_s12 = int_to_ptr.vmem [resolvable:$true] %s287_s12 }
  0x21   : > { %s5732_s30 = scalar_select %p67_p7, %s5572_s29, %s69_s14  }
  0x22   : > { %s284_s18 = sadd.s32 %s4512_s7, %s4438_s22  ;;  %s6673_s1 = sld [smem:[#allocation28_spill]] }
  0x23   : > { %6671 = sst [smem:[#allocation26_spill]] %s5732_s30  ;;  %s3984_s15 = sshll.u32 %s284_s18, 6 }
  0x24   : > { %s6641_s14 = scalar_lea.sflag [#allocation6], %s5719_s17  ;;  %p5280_p10 = pneg %p5741_p8 }
  0x28   : > { %s5748_s20 = scalar_lea.hbm %s6673_s1, %s3984_s15  ;;  %s5283_s23 = scalar_lea.hbm %s6673_s1, 204800 }
  0x29   : > { %s5278_s16 = scalar_lea.hbm %s5748_s20, 51200  ;;  %p5284_p13 = scmp.lt.u32.totalorder %s5748_s20, %s6673_s1 }
  0x2a   : > { %p5279_p9 = scmp.ne.s32.totalorder %s5748_s20, %s5278_s16  ;;  %p5285_p0 = scmp.lt.u32.totalorder %s5283_s23, %s5278_s16 }
  0x2b   : > { %p5287_p3 = scmp.lt.u32.totalorder %s5278_s16, %s5748_s20 }
  0x2c   : > { %p5281_p11 = pnand %p5280_p10, %p5279_p9  ;;  %p5286_p1 = por %p5285_p0, %p5284_p13 }
  0x2e   : > { %p5282_p12 = pneg %p5281_p11  ;;  %p5288_p4 = por %p5287_p3, %p5286_p1 }
  0x30   : > { %p5289_p7 = pnand %p5288_p4, %p5282_p12 }
  0x32   : > { %5292 = shalt.err (!%p5289_p7)
}
  0x33   : > { %s5293_s15 = scalar_lea.vmem %s5735_s12, 51200  ;;  %s5594_s21 = smov [#allocation5]  }
  0x34   : > { %p5294_p9 = scmp.ne.s32.totalorder %s5735_s12, %s5293_s15  ;;  %s5298_s7 = sshll.u32 %s5594_s21, 4  ;;  %s5299_s7 = int_to_ptr.vmem [resolvable:$false] %s5298_s7 }
  0x35   : > { %s5300_s22 = scalar_lea.vmem %s5299_s7, 102400  ;;  %p5301_p2 = scmp.lt.s32.totalorder %s5735_s12, %s5299_s7 }
  0x36   : > { %p5296_p11 = pnand %p5294_p9, %p5280_p10  ;;  %p5302_p13 = scmp.lt.s32.totalorder %s5300_s22, %s5293_s15 }
  0x38   : > { %p5297_p5 = pneg %p5296_p11  ;;  %p5303_p0 = por %p5302_p13, %p5301_p2 }
  0x3a   : > { %p5304_p1 = pnand %p5303_p0, %p5297_p5 }
  0x3c   : > { %5307 = shalt.err (!%p5304_p1)
}
  0x3d   : > { %s6642_s16 = smov 128   ;;  %s6643_s23 = smov 8  }
  0x3e   : > { %4537 = dma.hbm_to_vmem [thread:$0]  (!%p5741_p8), %s5748_s20, 51200, %s5735_s12, %s6641_s14, %s6642_s16, %s6642_s16, %s6643_s23  }
  0x3f   : > { %s5782_s13 = sshll.u32 %s5588_s10, 5  ;;  %s95_s18 = sadd.s32 1, %s5560_s26 }
  0x40   : > { %p102_p2 = scmp.ne.s32.totalorder %s5560_s26, %s5556_s25  ;;  %p6675_p5 = scmp.eq.s32.totalorder %s5592_s11, 0 }
  0x41   : > { %s5790_s15 = scalar_select %p93_p6, %s5560_s26, %s95_s18  }
  0x42   : > { %p104_p10 = por %p102_p2, %p6675_p5  ;;  %s5795_s21 = sand.u32 1, %s5560_s26  }
  0x43   : > { %6674 = sst [smem:[#allocation27_spill]] %s5790_s15  ;;  %s5798_s7 = sshll.u32 %s5795_s21, 1 }
  0x44   : > { %p6676_p12 = scmp.lt.s32.totalorder %s5592_s11, 4  ;;  %s6678_s3 = sld [smem:[#allocation29_spill]] }
  0x45   : > { %s320_s22 = scalar_lea.vmem [#allocation8], %s5798_s7 }
  0x46   : > { %p5802_p3 = pnand %p6676_p12, %p104_p10  ;;  %s328_s18 = sshll.u32 %s320_s22, 4  ;;  %s5813_s18 = int_to_ptr.vmem [resolvable:$true] %s328_s18 }
  0x48   : > { %s6677_s8 = scalar_select %p5802_p3, 1, 0 }
  0x49   : > { %p5820_p8 = pneg %p5802_p3 }
  0x4a   : > { %s5810_s19 = scalar_lea.hbm %s6678_s3, %s5782_s13  ;;  %s5313_s1 = scalar_lea.hbm %s6678_s3, 64 }
  0x4b   : > { %s5308_s16 = scalar_lea.hbm %s5810_s19, 32  ;;  %p5314_p9 = scmp.lt.u32.totalorder %s5810_s19, %s6678_s3 }
  0x4c   : > { %p5309_p6 = scmp.ne.s32.totalorder %s5810_s19, %s5308_s16  ;;  %p5315_p11 = scmp.lt.u32.totalorder %s5313_s1, %s5308_s16 }
  0x4d   : > { %s6679_s23 = scalar_select %p5820_p8, 1, 0 }
  0x4e   : > { %p5311_p4 = pnand %p5820_p8, %p5309_p6  ;;  %p5316_p13 = por %p5315_p11, %p5314_p9 }
  0x4f   : > { %p5317_p0 = scmp.lt.u32.totalorder %s5308_s16, %s5810_s19 }
  0x50   : > { %p5312_p7 = pneg %p5311_p4 }
  0x51   : > { %p5318_p1 = por %p5317_p0, %p5316_p13 }
  0x53   : > { %p5319_p2 = pnand %p5318_p1, %p5312_p7 }
  0x55   : > { %5322 = shalt.err (!%p5319_p2)
}
  0x56   : > { %s5323_s14 = scalar_lea.vmem %s5813_s18, 32  ;;  %s5597_s12 = smov [#allocation8]  }
  0x57   : > { %p5324_p5 = scmp.ne.s32.totalorder %s5813_s18, %s5323_s14  ;;  %s5328_s20 = sshll.u32 %s5597_s12, 4  ;;  %s5329_s20 = int_to_ptr.vmem [resolvable:$false] %s5328_s20 }
  0x58   : > { %s5330_s9 = scalar_lea.vmem %s5329_s20, 64  ;;  %p5331_p6 = scmp.lt.s32.totalorder %s5813_s18, %s5329_s20 }
  0x59   : > { %p5326_p10 = pnand %p5324_p5, %p5820_p8  ;;  %p5332_p4 = scmp.lt.s32.totalorder %s5330_s9, %s5323_s14 }
  0x5b   : > { %p5327_p12 = pneg %p5326_p10  ;;  %p5333_p9 = por %p5332_p4, %p5331_p6 }
  0x5d   : > { %p5334_p11 = pnand %p5333_p9, %p5327_p12 }
  0x5f   : > { %5337 = shalt.err (!%p5334_p11)
}
  0x60   : > { %s6680_s1 = scalar_lea.sflag [#allocation9], %s5719_s17  ;;  %s3994_s16 = sshll.u32 %s5795_s21, 8 }
  0x61   : > { %4543 = dma.hbm_to_vmem [thread:$0]  (!%p5802_p3), %s5810_s19, 32, %s5813_s18, %s6680_s1  }
  0x62   : > { %s4442_s22 = sshll.u32 %s5588_s10, 12  ;;  %s6681_s5 = sld [smem:[#allocation30_spill]] }
  0x63   : > { %s358_s20 = scalar_lea.vmem [#allocation11], %s3994_s16  ;;  %s6647_s30 = scalar_lea.sflag [#allocation12], %s5719_s17 }
  0x64   : > { %s365_s9 = sshll.u32 %s358_s20, 4  ;;  %s5852_s9 = int_to_ptr.vmem [resolvable:$true] %s365_s9 }
  0x68   : > { %s5850_s14 = scalar_lea.hbm %s6681_s5, %s4442_s22  ;;  %s5343_s3 = scalar_lea.hbm %s6681_s5, 8192 }
  0x69   : > { %s5338_s29 = scalar_lea.hbm %s5850_s14, 4096  ;;  %p5344_p1 = scmp.lt.u32.totalorder %s5850_s14, %s6681_s5 }
  0x6a   : > { %p5339_p7 = scmp.ne.s32.totalorder %s5850_s14, %s5338_s29  ;;  %p5345_p2 = scmp.lt.u32.totalorder %s5343_s3, %s5338_s29 }
  0x6b   : > { %p5347_p10 = scmp.lt.u32.totalorder %s5338_s29, %s5850_s14 }
  0x6c   : > { %p5341_p13 = pnand %p5339_p7, %p5820_p8  ;;  %p5346_p5 = por %p5345_p2, %p5344_p1 }
  0x6e   : > { %p5342_p0 = pneg %p5341_p13  ;;  %p5348_p12 = por %p5347_p10, %p5346_p5 }
  0x70   : > { %p5349_p6 = pnand %p5348_p12, %p5342_p0 }
  0x72   : > { %5352 = shalt.err (!%p5349_p6)
}
  0x73   : > { %s5353_s16 = scalar_lea.vmem %s5852_s9, 4096  ;;  %s5598_s12 = smov [#allocation11]  }
  0x74   : > { %p5354_p4 = scmp.ne.s32.totalorder %s5852_s9, %s5353_s16  ;;  %s5358_s20 = sshll.u32 %s5598_s12, 4  ;;  %s5359_s20 = int_to_ptr.vmem [resolvable:$false] %s5358_s20 }
  0x75   : > { %s5360_s19 = scalar_lea.vmem %s5359_s20, 8192  ;;  %p5361_p7 = scmp.lt.s32.totalorder %s5852_s9, %s5359_s20 }
  0x76   : > { %p5356_p9 = pnand %p5354_p4, %p5820_p8  ;;  %p5362_p13 = scmp.lt.s32.totalorder %s5360_s19, %s5353_s16 }
  0x78   : > { %p5357_p11 = pneg %p5356_p9  ;;  %p5363_p1 = por %p5362_p13, %p5361_p7 }
  0x7a   : > { %p5364_p2 = pnand %p5363_p1, %p5357_p11 }
  0x7c   : > { %5367 = shalt.err (!%p5364_p2)
}
  0x7d   : > { %s6682_s29 = smov 8   ;;  %s6683_s18 = smov 128  }
  0x7e   : > { %4549 = dma.hbm_to_vmem [thread:$0]  (!%p5802_p3), %s5850_s14, 4096, %s5852_s9, %s6647_s30, %s6683_s18, %s6683_s18, %s6682_s29  }
  0x7f   : > { %s6646_s3 = sadd.s32 4294967295, %s5592_s11   ;;  %p82_p0 = scmp.ne.s32.totalorder %s5568_s28, %s5564_s27 }
  0x80   : > { %p5886_p5 = scmp.eq.s32.totalorder %s6646_s3, 0  ;;  %p108_p10 = scmp.ne.s32.totalorder %s5556_s25, %s5552_s24 }
  0x81   : > { %p3980_p12 = scmp.ge.s32.totalorder %s5592_s11, 1  ;;  %p249_p4 = scmp.lt.s32.totalorder %s5592_s11, 5 }
  0x82   : > { %s6684_s1 = scalar_select %p5886_p5, 1, 0 }
  0x83   : > { %p5895_p6 = por %p5886_p5, %p82_p0  ;;  %p5902_p9 = por %p108_p10, %p5886_p5 }
  0x84   : > { %p5906_p11 = pnand %p3980_p12, %p249_p4  ;;  %s5599_s9 = smov [#allocation3]  }
  0x85   : > { %s6685_s22 = scalar_select %p5895_p6, 1, 0 }
  0x86   : > { %s6686_s27 = scalar_select %p5902_p9, 1, 0 }
  0x87   : > { %s6687_s14 = scalar_select %p5906_p11, 1, 0 }
  0x88   : > { %s262_s24 = sshll.u32 %s5599_s9, 4  ;;  %p4530_p7 = pneg %p5906_p11  ;;  %s5912_s24 = int_to_ptr.vmem [resolvable:$true] %s262_s24 }
  0x89   : > { %s5918_s20 = scalar_lea.hbm %s6629_s2, %s5782_s13  ;;  %s301_s19 = scalar_lea.vmem [#allocation7], %s5798_s7 }
  0x8a   : > { %s309_s29 = sshll.u32 %s301_s19, 4  ;;  %p5923_p13 = pnand %p4530_p7, %p5886_p5  ;;  %s310_s29 = int_to_ptr.vmem [resolvable:$true] %s309_s29 }
  0x8b   : > { %s5368_s9 = scalar_lea.hbm %s5918_s20, 32  ;;  %s5373_s3 = scalar_lea.hbm %s6629_s2, 64 }
  0x8c   : > { %s6688_s18 = scalar_select %p5923_p13, 1, 0 }
  0x8d   : > { %p5369_p1 = scmp.ne.s32.totalorder %s5918_s20, %s5368_s9  ;;  %p5374_p10 = scmp.lt.u32.totalorder %s5918_s20, %s6629_s2 }
  0x8e   : > { %p5375_p12 = scmp.lt.u32.totalorder %s5373_s3, %s5368_s9  ;;  %p5377_p7 = scmp.lt.u32.totalorder %s5368_s9, %s5918_s20 }
  0x8f   : > { %p5371_p2 = pnand %p5369_p1, %p5820_p8 }
  0x90   : > { %p5376_p4 = por %p5375_p12, %p5374_p10 }
  0x91   : > { %p5372_p0 = pneg %p5371_p2 }
  0x92   : > { %p5378_p9 = por %p5377_p7, %p5376_p4 }
  0x94   : > { %p5379_p6 = pnand %p5378_p9, %p5372_p0 }
  0x96   : > { %5382 = shalt.err (!%p5379_p6)
}
  0x97   : > { %s5383_s19 = scalar_lea.vmem %s310_s29, 32  ;;  %s5600_s15 = smov [#allocation7]  }
  0x98   : > { %p5384_p5 = scmp.ne.s32.totalorder %s310_s29, %s5383_s19  ;;  %s5388_s26 = sshll.u32 %s5600_s15, 4  ;;  %s5389_s26 = int_to_ptr.vmem [resolvable:$false] %s5388_s26 }
  0x99   : > { %s5390_s16 = scalar_lea.vmem %s5389_s26, 64  ;;  %p5391_p11 = scmp.lt.s32.totalorder %s310_s29, %s5389_s26 }
  0x9a   : > { %p5386_p1 = pnand %p5384_p5, %p5820_p8  ;;  %p5392_p13 = scmp.lt.s32.totalorder %s5390_s16, %s5383_s19 }
  0x9c   : > { %p5387_p2 = pneg %p5386_p1  ;;  %p5393_p3 = por %p5392_p13, %p5391_p11 }
  0x9e   : > { %p5394_p10 = pnand %p5393_p3, %p5387_p2 }
  0xa0   : > { %5397 = shalt.err (!%p5394_p10)
}
  0xa1   : > { %p6689_p12 = scmp.ne.s32.totalorder %s6677_s8, 0  ;;  %s6690_s5 = scalar_lea.sflag [#allocation6], %s5719_s17 }
  0xa2   : > { %s5398_s9 = scalar_lea.hbm %s6627_s0, 3200  ;;  %p6691_p6 = scmp.ne.s32.totalorder %s6688_s18, 0 }
  0xa3   : > { %4540 = dma.hbm_to_vmem [thread:$0]  (!%p6689_p12), %s5918_s20, 32, %s310_s29, %s6690_s5  }
  0xa4   : > { %p5399_p5 = scmp.ne.s32.totalorder %s6627_s0, %s5398_s9  ;;  %p5400_p9 = pneg %p6691_p6 }
  0xa5   : > { %p5405_p13 = scmp.lt.u32.totalorder %s5398_s9, %s6627_s0 }
  0xa6   : > { %p5401_p11 = pnand %p5400_p9, %p5399_p5 }
  0xa8   : > { %p5402_p3 = pneg %p5401_p11 }
  0xaa   : > { %p5407_p0 = pnand %p5405_p13, %p5402_p3 }
  0xac   : > { %5410 = shalt.err (!%p5407_p0)
}
  0xad   : > { %s5411_s20 = scalar_lea.vmem %s5912_s24, 3200  ;;  %p5419_p2 = scmp.lt.s32.totalorder %s5912_s24, %s5912_s24 }
  0xae   : > { %p5412_p4 = scmp.ne.s32.totalorder %s5912_s24, %s5411_s20  ;;  %p5420_p10 = scmp.lt.s32.totalorder %s5411_s20, %s5411_s20 }
  0xb0   : > { %p5414_p7 = pnand %p5412_p4, %p5400_p9  ;;  %p5421_p12 = por %p5420_p10, %p5419_p2 }
  0xb2   : > { %p5415_p1 = pneg %p5414_p7 }
  0xb4   : > { %p5422_p8 = pnand %p5421_p12, %p5415_p1 }
  0xb6   : > { %5425 = shalt.err (!%p5422_p8)
}
  0xb7   : > { %4533 = dma.hbm_to_vmem [thread:$0]  (!%p6691_p6), %s6627_s0, 3200, %s5912_s24, [#allocation4]  }
  0xb8   : > { %s5971_s3 = scalar_lea.hbm %s6631_s4, %s5782_s13  ;;  %s339_s9 = scalar_lea.vmem [#allocation10], %s5798_s7 }
  0xb9   : > { %s347_s18 = sshll.u32 %s339_s9, 4  ;;  %s3997_s12 = sshll.u32 %s5795_s21, 4  ;;  %s348_s18 = int_to_ptr.vmem [resolvable:$true] %s347_s18 }
  0xba   : > { %s5426_s15 = scalar_lea.hbm %s5971_s3, 32  ;;  %p6692_p12 = scmp.ne.s32.totalorder %s6679_s23, 0 }
  0xbb   : > { %p5427_p8 = scmp.ne.s32.totalorder %s5971_s3, %s5426_s15  ;;  %s5431_s19 = scalar_lea.hbm %s6631_s4, 64 }
  0xbc   : > { %p5432_p6 = scmp.lt.u32.totalorder %s5971_s3, %s6631_s4  ;;  %p5433_p11 = scmp.lt.u32.totalorder %s5431_s19, %s5426_s15 }
  0xbd   : > { %p5429_p5 = pnand %p5427_p8, %p6692_p12  ;;  %p5435_p13 = scmp.lt.u32.totalorder %s5426_s15, %s5971_s3 }
  0xbe   : > { %p5434_p3 = por %p5433_p11, %p5432_p6 }
  0xbf   : > { %p5430_p9 = pneg %p5429_p5 }
  0xc0   : > { %p5436_p0 = por %p5435_p13, %p5434_p3 }
  0xc2   : > { %p5437_p4 = pnand %p5436_p0, %p5430_p9 }
  0xc4   : > { %5440 = shalt.err (!%p5437_p4)
}
  0xc5   : > { %s5441_s7 = scalar_lea.vmem %s348_s18, 32  ;;  %s5601_s29 = smov [#allocation10]  }
  0xc6   : > { %p5442_p7 = scmp.ne.s32.totalorder %s348_s18, %s5441_s7  ;;  %s5446_s16 = sshll.u32 %s5601_s29, 4  ;;  %s5447_s16 = int_to_ptr.vmem [resolvable:$false] %s5446_s16 }
  0xc7   : > { %s5448_s5 = scalar_lea.vmem %s5447_s16, 64  ;;  %p5449_p10 = scmp.lt.s32.totalorder %s348_s18, %s5447_s16 }
  0xc8   : > { %p5444_p1 = pnand %p5442_p7, %p6692_p12  ;;  %p5450_p8 = scmp.lt.s32.totalorder %s5448_s5, %s5441_s7 }
  0xca   : > { %p5445_p2 = pneg %p5444_p1  ;;  %p5451_p5 = por %p5450_p8, %p5449_p10 }
  0xcc   : > { %p5452_p6 = pnand %p5451_p5, %p5445_p2 }
  0xce   : > { %5455 = shalt.err (!%p5452_p6)
}
  0xcf   : > { %p6693_p11 = scmp.ne.s32.totalorder %s6677_s8, 0  ;;  %s6694_s30 = scalar_lea.sflag [#allocation9], %s5719_s17 }
  0xd0   : > { %s4443_s9 = sshll.u32 %s5588_s10, 8  ;;  %s379_s19 = scalar_lea.vmem [#allocation13], %s3997_s12 }
  0xd1   : > { %4546 = dma.hbm_to_vmem [thread:$0]  (!%p6693_p11), %s5971_s3, 32, %s348_s18, %s6694_s30  }
  0xd2   : > { %s5998_s24 = scalar_lea.hbm %s6633_s6, %s4443_s9  ;;  %s387_s20 = sshll.u32 %s379_s19, 4  ;;  %s388_s20 = int_to_ptr.vmem [resolvable:$true] %s387_s20 }
  0xd3   : > { %s5456_s13 = scalar_lea.hbm %s5998_s24, 256  ;;  %s5461_s7 = scalar_lea.hbm %s6633_s6, 512 }
  0xd4   : > { %p5457_p9 = scmp.ne.s32.totalorder %s5998_s24, %s5456_s13  ;;  %p5462_p0 = scmp.lt.u32.totalorder %s5998_s24, %s6633_s6 }
  0xd5   : > { %p5463_p4 = scmp.lt.u32.totalorder %s5461_s7, %s5456_s13  ;;  %p5465_p1 = scmp.lt.u32.totalorder %s5456_s13, %s5998_s24 }
  0xd6   : > { %p5459_p3 = pnand %p5457_p9, %p6692_p12 }
  0xd7   : > { %p5464_p7 = por %p5463_p4, %p5462_p0 }
  0xd8   : > { %p5460_p13 = pneg %p5459_p3 }
  0xd9   : > { %p5466_p2 = por %p5465_p1, %p5464_p7 }
  0xdb   : > { %p5467_p10 = pnand %p5466_p2, %p5460_p13 }
  0xdd   : > { %5470 = shalt.err (!%p5467_p10)
}
  0xde   : > { %s5471_s21 = scalar_lea.vmem %s388_s20, 256  ;;  %s5602_s12 = smov [#allocation13]  }
  0xdf   : > { %p5472_p8 = scmp.ne.s32.totalorder %s388_s20, %s5471_s21  ;;  %s5476_s5 = sshll.u32 %s5602_s12, 4  ;;  %s5477_s5 = int_to_ptr.vmem [resolvable:$false] %s5476_s5 }
  0xe0   : > { %s5478_s30 = scalar_lea.vmem %s5477_s5, 512  ;;  %p5479_p9 = scmp.lt.s32.totalorder %s388_s20, %s5477_s5 }
  0xe1   : > { %p5474_p5 = pnand %p5472_p8, %p6692_p12  ;;  %p5480_p3 = scmp.lt.s32.totalorder %s5478_s30, %s5471_s21 }
  0xe3   : > { %p5475_p6 = pneg %p5474_p5  ;;  %p5481_p11 = por %p5480_p3, %p5479_p9 }
  0xe5   : > { %p5482_p0 = pnand %p5481_p11, %p5475_p6 }
  0xe7   : > { %5485 = shalt.err (!%p5482_p0)
}
  0xe8   : > { %p6695_p4 = scmp.ne.s32.totalorder %s6677_s8, 0  ;;  %s6696_s9 = scalar_lea.sflag [#allocation12], %s5719_s17 }
  0xe9   : > { %p6697_p13 = scmp.ne.s32.totalorder %s6687_s14, 0 }
  0xea   : > { %4552 = dma.hbm_to_vmem [thread:$0]  (!%p6695_p4), %s5998_s24, 256, %s388_s20, %s6696_s9  }
  0xeb   : > { %396 = sbr.rel (%p6697_p13) target bundleno = 1197 (0x4ad), region = 48  ;;  %p6698_p12 = scmp.ne.s32.totalorder (!%p6697_p13), %s6684_s1, 0 }
  0xf2   : > { %5531 = dma.done.wait (%p6698_p12), [#allocation4], 3200  }
  0xf3   : > { %5533 = vsyncadd (%p6698_p12), [#allocation4], 4294964096  ;;  %s6699_s23 = sadd.s32 4294967295, %s5592_s11   ;;  %s404_s26 = sand.u32 1, %s5568_s28  }
  0xf4   : > { %s402_s15 = sand.u32 1, %s6699_s23   ;;  %s4513_s8 = smul.u32 3200, %s404_s26 }
  0xf5   : > { %s403_s19 = scalar_lea.sflag [#allocation6], %s402_s15  ;;  %p6700_p11 = scmp.ne.s32.totalorder %s6685_s22, 0 }
  0xf6   : > { %s6030_s17 = scalar_lea.vmem [#allocation5], %s4513_s8 }
  0xf7   : > { %5535 = dma.done.wait (%p6700_p11), %s403_s19, 51200  }
  0xf8   : > { %5537 = vsyncadd (%p6700_p11), %s403_s19, 4294916096  ;;  %s413_s14 = sand.u32 1, %s5556_s25   ;;  %p6701_p7 = scmp.ne.s32.totalorder %s6686_s27, 0 }
  0xf9   : > { %s6037_s1 = sshll.u32 %s413_s14, 1 }
  0xfa   : > { %s415_s24 = scalar_lea.vmem [#allocation7], %s6037_s1 }
  0xfb   : > { %5539 = dma.done.wait (%p6701_p7), %s403_s19, 32  }
  0xfc   : > { %5541 = vsyncadd (%p6701_p7), %s403_s19, 4294967264  ;;  %s421_s20 = scalar_lea.sflag [#allocation9], %s402_s15  ;;  %s424_s13 = scalar_lea.vmem [#allocation8], %s6037_s1 }
  0xfd   : > { %5543 = dma.done.wait (%p6701_p7), %s421_s20, 64  }
  0xfe   : > { %5545 = vsyncadd (%p6701_p7), %s421_s20, 4294967232  ;;  %s4005_s22 = sshll.u32 %s413_s14, 8  ;;  %s433_s3 = scalar_lea.vmem [#allocation10], %s6037_s1 }
  0xff   : > { %s439_s18 = scalar_lea.sflag [#allocation12], %s402_s15  ;;  %s6050_s7 = scalar_lea.vmem [#allocation11], %s4005_s22 }
 0x100   : > { %5547 = dma.done.wait (%p6701_p7), %s439_s18, 4352  }
 0x101   : > { %5549 = vsyncadd (%p6701_p7), %s439_s18, 4294962944  ;;  %s6702_s29 = sld [smem:[#allocation22_spill]]  ;;  %s4006_s16 = sshll.u32 %s413_s14, 4 }
 0x102   : > { %s6703_s30 = sld [smem:[#allocation31_spill]]  ;;  %s6063_s23 = scalar_lea.vmem [#allocation13], %s4006_s16 }
 0x103   : > { %s6704_s15 = sld [smem:[#allocation21_spill]] }
 0x107   : > { %p512_p1 = scmp.lt.s32.totalorder %s6702_s29, 1 }
 0x109   : > { %s6726_s29 = smov (!%p512_p1, %s6702_s29), 1  ;;  %p4008_p2 = scmp.ne.s32.totalorder %s6704_s15, 0 }
 0x10a   : > { %s4007_s21 = sshll.u32 %s6726_s29, 3  ;;  %v523_v0 = vlaneseq (!%p4008_p2)  ;;  %v521_v2 = vld [vmem:[%s415_s24] sm:$0x3] (!%p4008_p2) }
 0x10b   : > { %s6061_s9 = scalar_lea.vmem %s6703_s30, %s4007_s21  ;;  %520 = sbr.rel (%p4008_p2) target bundleno = 275 (0x113), region = 80 }
 0x10c   : > { %v524_v1 = vshrl.u32 (!%p4008_p2), %v523_v0, 7 }
 0x10e   : > { %v525_v3 = vsub.s32 (!%p4008_p2), 0, %v524_v1  ;;  %v529_v4 = vsub.s32 (!%p4008_p2), 1, %v524_v1 }
 0x110   : > { %v526_v5 = vrot.slane (!%p4008_p2), %v521_v2, %v525_v3  ;;  %v530_v6 = vrot.slane (!%p4008_p2), %v521_v2, %v529_v4 }
 0x112   : > { %533 = vst [vmem:[#allocation2] sm:$0xff] %v526_v5  ;;  %534 = vst [vmem:[#allocation2 + $0x8] sm:$0xff] %v530_v6 }
 0x113 PF: > { %v4649_v7 = vld [vmem:[%s6030_s17 + $0x4] ss:$8 sps:$4 sm:$0xff]   ;;  %v4653_v9 = vld [vmem:[%s6030_s17] ss:$8 sps:$4 sm:$0xff]   ;;  %v4655_v11 = vld [vmem:[%s6030_s17 + $0x14] ss:$8 sps:$4 sm:$0xff]  }
 0x114   : > { %v4651_v8 = vld [vmem:[%s6030_s17 + $0x104] ss:$8 sps:$4 sm:$0xff]   ;;  %3043 = vmatprep.subr.bf16.mxu0 %v4649_v7  ;;  %v4654_v10 = vld [vmem:[%s6030_s17 + $0x100] ss:$8 sps:$4 sm:$0xff]   ;;  %v4657_v12 = vld [vmem:[%s6030_s17 + $0x114] ss:$8 sps:$4 sm:$0xff]  }
 0x115   : > { %3084 = vmatprep.subr.bf16.mxu1 %v4651_v8  ;;  %3044 = vmatpush1.bf16.msra.mxu0 %v4653_v9  ;;  %v4659_v13 = vld [vmem:[%s6030_s17 + $0x10] ss:$8 sps:$4 sm:$0xff]   ;;  %v4661_v15 = vld [vmem:[%s6030_s17 + $0x24] ss:$8 sps:$4 sm:$0xff]   ;;  %v4665_v17 = vld [vmem:[%s6030_s17 + $0x20] ss:$8 sps:$4 sm:$0xff]  }
 0x116   : > { %3085 = vmatpush1.bf16.msra.mxu1 %v4654_v10  ;;  %3045 = vmatprep.subr.bf16.mxu0 %v4655_v11  ;;  %v4660_v14 = vld [vmem:[%s6030_s17 + $0x110] ss:$8 sps:$4 sm:$0xff]   ;;  %v4663_v16 = vld [vmem:[%s6030_s17 + $0x124] ss:$8 sps:$4 sm:$0xff]   ;;  %v4666_v18 = vld [vmem:[%s6030_s17 + $0x120] ss:$8 sps:$4 sm:$0xff]  }
 0x117   : > { %3086 = vmatprep.subr.bf16.mxu1 %v4657_v12  ;;  %v4667_v19 = vld [vmem:[%s6030_s17 + $0x34] ss:$8 sps:$4 sm:$0xff]   ;;  %v4671_v21 = vld [vmem:[%s6030_s17 + $0x30] ss:$8 sps:$4 sm:$0xff]   ;;  %v4673_v23 = vld [vmem:[%s6030_s17 + $0x44] ss:$8 sps:$4 sm:$0xff]  }
 0x118   : > { %v4669_v20 = vld [vmem:[%s6030_s17 + $0x134] ss:$8 sps:$4 sm:$0xff]   ;;  %v4672_v22 = vld [vmem:[%s6030_s17 + $0x130] ss:$8 sps:$4 sm:$0xff]   ;;  %v4675_v24 = vld [vmem:[%s6030_s17 + $0x144] ss:$8 sps:$4 sm:$0xff]  }
 0x119   : > { %3046 = vmatpush1.bf16.msra.mxu0 %v4659_v13  ;;  %v4677_v25 = vld [vmem:[%s6030_s17 + $0x40] ss:$8 sps:$4 sm:$0xff]   ;;  %v4679_v27 = vld [vmem:[%s6030_s17 + $0x54] ss:$8 sps:$4 sm:$0xff]   ;;  %v4683_v29 = vld [vmem:[%s6030_s17 + $0x50] ss:$8 sps:$4 sm:$0xff]  }
 0x11a   : > { %3087 = vmatpush1.bf16.msra.mxu1 %v4660_v14  ;;  %3047 = vmatprep.subr.bf16.mxu0 %v4661_v15  ;;  %v4678_v26 = vld [vmem:[%s6030_s17 + $0x140] ss:$8 sps:$4 sm:$0xff]   ;;  %v4681_v28 = vld [vmem:[%s6030_s17 + $0x154] ss:$8 sps:$4 sm:$0xff]   ;;  %v4684_v30 = vld [vmem:[%s6030_s17 + $0x150] ss:$8 sps:$4 sm:$0xff]  }
 0x11b   : > { %3088 = vmatprep.subr.bf16.mxu1 %v4663_v16  ;;  %v4685_v31 = vld [vmem:[%s6030_s17 + $0x64] ss:$8 sps:$4 sm:$0xff]   ;;  %v4689_v33 = vld [vmem:[%s6030_s17 + $0x60] ss:$8 sps:$4 sm:$0xff]   ;;  %s6705_s27 = sld [smem:[#allocation21_spill]] }
 0x11c   : > { %v4687_v32 = vld [vmem:[%s6030_s17 + $0x164] ss:$8 sps:$4 sm:$0xff]   ;;  %v4690_v34 = vld [vmem:[%s6030_s17 + $0x160] ss:$8 sps:$4 sm:$0xff]   ;;  %v4691_v35 = vld [vmem:[%s6030_s17 + $0x74] ss:$8 sps:$4 sm:$0xff]  }
 0x11d   : > { %3048 = vmatpush1.bf16.msra.mxu0 %v4665_v17  ;;  %v4693_v36 = vld [vmem:[%s6030_s17 + $0x174] ss:$8 sps:$4 sm:$0xff]   ;;  %v4695_v37 = vld [vmem:[%s6030_s17 + $0x70] ss:$8 sps:$4 sm:$0xff]   ;;  %v4697_v39 = vld [vmem:[%s6030_s17 + $0x84] ss:$8 sps:$4 sm:$0xff]  }
 0x11e   : > { %3089 = vmatpush1.bf16.msra.mxu1 %v4666_v18  ;;  %3049 = vmatprep.subr.bf16.mxu0 %v4667_v19  ;;  %v4696_v38 = vld [vmem:[%s6030_s17 + $0x170] ss:$8 sps:$4 sm:$0xff]   ;;  %v4699_v40 = vld [vmem:[%s6030_s17 + $0x184] ss:$8 sps:$4 sm:$0xff]   ;;  %v4701_v41 = vld [vmem:[%s6030_s17 + $0x80] ss:$8 sps:$4 sm:$0xff]  }
 0x11f   : > { %3090 = vmatprep.subr.bf16.mxu1 %v4669_v20  ;;  %v4702_v42 = vld [vmem:[%s6030_s17 + $0x180] ss:$8 sps:$4 sm:$0xff]   ;;  %v4703_v43 = vld [vmem:[%s6030_s17 + $0x94] ss:$8 sps:$4 sm:$0xff]   ;;  %v4707_v45 = vld [vmem:[%s6030_s17 + $0x90] ss:$8 sps:$4 sm:$0xff]  }
 0x120   : > { %v4705_v44 = vld [vmem:[%s6030_s17 + $0x194] ss:$8 sps:$4 sm:$0xff]   ;;  %v4708_v46 = vld [vmem:[%s6030_s17 + $0x190] ss:$8 sps:$4 sm:$0xff]   ;;  %v4709_v47 = vld [vmem:[%s6030_s17 + $0xa4] ss:$8 sps:$4 sm:$0xff]  }
 0x121   : > { %3050 = vmatpush1.bf16.msra.mxu0 %v4671_v21  ;;  %s535_s26 = smul.u32 3200, %s6705_s27  ;;  %v4711_v48 = vld [vmem:[%s6030_s17 + $0x1a4] ss:$8 sps:$4 sm:$0xff]   ;;  %v4713_v49 = vld [vmem:[%s6030_s17 + $0xa0] ss:$8 sps:$4 sm:$0xff]   ;;  %p4435_p10 = scmp.ne.s32.totalorder %s6705_s27, 1 }
 0x122   : > { %3091 = vmatpush1.bf16.msra.mxu1 %v4672_v22  ;;  %3051 = vmatprep.subr.bf16.mxu0 %v4673_v23  ;;  %v4714_v50 = vld [vmem:[%s6030_s17 + $0x1a0] ss:$8 sps:$4 sm:$0xff]   ;;  %v4715_v51 = vld [vmem:[%s6030_s17 + $0xb4] ss:$8 sps:$4 sm:$0xff]   ;;  %v4719_v56 = vld [vmem:[%s6030_s17 + $0xb0] ss:$8 sps:$4 sm:$0xff]  }
 0x123   : > { %3092 = vmatprep.subr.bf16.mxu1 %v4675_v24  ;;  %s536_s8 = sshra.s32 %s535_s26, 7  ;;  %v4717_v52 = vld [vmem:[%s6030_s17 + $0x1b4] ss:$8 sps:$4 sm:$0xff]   ;;  %v4720_v57 = vld [vmem:[%s6030_s17 + $0x1b0] ss:$8 sps:$4 sm:$0xff]  }
 0x124   : > { %s4009_s19 = sshll.u32 %s536_s8, 2  ;;  %v4721_v59 = vld [vmem:[%s6030_s17 + $0xc4] ss:$8 sps:$4 sm:$0xff]   ;;  %v4725_v61 = vld [vmem:[%s6030_s17 + $0xc0] ss:$8 sps:$4 sm:$0xff]  }
 0x125   : > { %3052 = vmatpush1.bf16.msra.mxu0 %v4677_v25  ;;  %s6113_s14 = scalar_lea.vmem [#allocation3], %s4009_s19  ;;  %v4723_v60 = vld [vmem:[%s6030_s17 + $0x1c4] ss:$8 sps:$4 sm:$0xff]   ;;  %v4726_v62 = vld [vmem:[%s6030_s17 + $0x1c0] ss:$8 sps:$4 sm:$0xff]  }
 0x126   : > { %3093 = vmatpush1.bf16.msra.mxu1 %v4678_v26  ;;  %3053 = vmatprep.subr.bf16.mxu0 %v4679_v27  ;;  %v540_v53 = vld [vmem:[%s6113_s14] sm:$0xff]  ;;  %v541_v55 = vld [vmem:[%s6113_s14 + $0x8] sm:$0xff] }
 0x127   : > { %3094 = vmatprep.subr.bf16.mxu1 %v4681_v28  ;;  %v4011_v54 = vcombine.high %v540_v53, %v540_v53  ;;  %v4013_v58 = vcombine.high %v541_v55, %v541_v55  ;;  %v4727_v63 = vld [vmem:[%s6030_s17 + $0xd4] ss:$8 sps:$4 sm:$0xff]   ;;  %v4731_v1 = vld [vmem:[%s6030_s17 + $0xd0] ss:$8 sps:$4 sm:$0xff]   ;;  %v4733_v3 = vld [vmem:[%s6030_s17 + $0xe4] ss:$8 sps:$4 sm:$0xff]   ;;  %v4010_v13 = vcombine.low %v540_v53, %v540_v53  ;;  %v4012_v14 = vcombine.low %v541_v55, %v541_v55 }
 0x128   : > { %v4729_v0 = vld [vmem:[%s6030_s17 + $0x1d4] ss:$8 sps:$4 sm:$0xff]   ;;  %v4732_v2 = vld [vmem:[%s6030_s17 + $0x1d0] ss:$8 sps:$4 sm:$0xff]   ;;  %v4735_v4 = vld [vmem:[%s6030_s17 + $0x1e4] ss:$8 sps:$4 sm:$0xff]  }
 0x129   : > { %3054 = vmatpush1.bf16.msra.mxu0 %v4683_v29  ;;  %3075 = vmatprep.mubr.bf16.mxu0 %v4011_v54  ;;  %v4737_v5 = vld [vmem:[%s6030_s17 + $0xe0] ss:$8 sps:$4 sm:$0xff]   ;;  %v4739_v7 = vld [vmem:[%s6030_s17 + $0xf4] ss:$8 sps:$4 sm:$0xff]   ;;  %v4743_v9 = vld [vmem:[%s6030_s17 + $0xf0] ss:$8 sps:$4 sm:$0xff]  }
 0x12a   : > { %3095 = vmatpush1.bf16.msra.mxu1 %v4684_v30  ;;  %3055 = vmatprep.subr.bf16.mxu0 %v4685_v31  ;;  %v4738_v6 = vld [vmem:[%s6030_s17 + $0x1e0] ss:$8 sps:$4 sm:$0xff]   ;;  %v4741_v8 = vld [vmem:[%s6030_s17 + $0x1f4] ss:$8 sps:$4 sm:$0xff]   ;;  %v4744_v10 = vld [vmem:[%s6030_s17 + $0x1f0] ss:$8 sps:$4 sm:$0xff]  }
 0x12b   : > { %3096 = vmatprep.subr.bf16.mxu1 %v4687_v32  ;;  %3116 = vmatprep.mubr.bf16.mxu1 %v4013_v58  ;;  %v4751_v11 = vld [vmem:[%s6030_s17 + $0x204] ss:$8 sps:$4 sm:$0xff]   ;;  %v4749_v15 = vld [vmem:[%s6030_s17 + $0x200] ss:$8 sps:$4 sm:$0xff]   ;;  %v4757_v17 = vld [vmem:[%s6030_s17 + $0x214] ss:$8 sps:$4 sm:$0xff]  }
 0x12c   : > { %v4754_v12 = vld [vmem:[%s6030_s17 + $0x304] ss:$8 sps:$4 sm:$0xff]   ;;  %v4752_v16 = vld [vmem:[%s6030_s17 + $0x300] ss:$8 sps:$4 sm:$0xff]   ;;  %v4760_v18 = vld [vmem:[%s6030_s17 + $0x314] ss:$8 sps:$4 sm:$0xff]  }
 0x12d   : > { %3056 = vmatpush1.bf16.msra.mxu0 %v4689_v33  ;;  %v4755_v19 = vld [vmem:[%s6030_s17 + $0x210] ss:$8 sps:$4 sm:$0xff]   ;;  %v4763_v21 = vld [vmem:[%s6030_s17 + $0x224] ss:$8 sps:$4 sm:$0xff]   ;;  %v4761_v23 = vld [vmem:[%s6030_s17 + $0x220] ss:$8 sps:$4 sm:$0xff]  }
 0x12e   : > { %3097 = vmatpush1.bf16.msra.mxu1 %v4690_v34  ;;  %3057 = vmatprep.subr.bf16.mxu0 %v4691_v35  ;;  %v4758_v20 = vld [vmem:[%s6030_s17 + $0x310] ss:$8 sps:$4 sm:$0xff]   ;;  %v4766_v22 = vld [vmem:[%s6030_s17 + $0x324] ss:$8 sps:$4 sm:$0xff]   ;;  %v4764_v24 = vld [vmem:[%s6030_s17 + $0x320] ss:$8 sps:$4 sm:$0xff]  }
 0x12f   : > { %3098 = vmatprep.subr.bf16.mxu1 %v4693_v36  ;;  %v4769_v25 = vld [vmem:[%s6030_s17 + $0x234] ss:$8 sps:$4 sm:$0xff]   ;;  %v4767_v27 = vld [vmem:[%s6030_s17 + $0x230] ss:$8 sps:$4 sm:$0xff]   ;;  %v4775_v29 = vld [vmem:[%s6030_s17 + $0x244] ss:$8 sps:$4 sm:$0xff]  }
 0x130   : > { %v4772_v26 = vld [vmem:[%s6030_s17 + $0x334] ss:$8 sps:$4 sm:$0xff]   ;;  %v4770_v28 = vld [vmem:[%s6030_s17 + $0x330] ss:$8 sps:$4 sm:$0xff]   ;;  %v4778_v30 = vld [vmem:[%s6030_s17 + $0x344] ss:$8 sps:$4 sm:$0xff]  }
 0x131   : > { %3058 = vmatpush1.bf16.msra.mxu0 %v4695_v37  ;;  %v4773_v31 = vld [vmem:[%s6030_s17 + $0x240] ss:$8 sps:$4 sm:$0xff]   ;;  %v4781_v33 = vld [vmem:[%s6030_s17 + $0x254] ss:$8 sps:$4 sm:$0xff]   ;;  %v4779_v35 = vld [vmem:[%s6030_s17 + $0x250] ss:$8 sps:$4 sm:$0xff]  }
 0x132   : > { %3099 = vmatpush1.bf16.msra.mxu1 %v4696_v38  ;;  %3059 = vmatprep.subr.bf16.mxu0 %v4697_v39  ;;  %v4776_v32 = vld [vmem:[%s6030_s17 + $0x340] ss:$8 sps:$4 sm:$0xff]   ;;  %v4784_v34 = vld [vmem:[%s6030_s17 + $0x354] ss:$8 sps:$4 sm:$0xff]   ;;  %v4782_v36 = vld [vmem:[%s6030_s17 + $0x350] ss:$8 sps:$4 sm:$0xff]  }
 0x133   : > { %3100 = vmatprep.subr.bf16.mxu1 %v4699_v40  ;;  %v4787_v37 = vld [vmem:[%s6030_s17 + $0x264] ss:$8 sps:$4 sm:$0xff]   ;;  %v6162_v39 = vld [vmem:[%s6113_s14 + $0x10] sm:$0xff]  ;;  %v4785_v40 = vld [vmem:[%s6030_s17 + $0x260] ss:$8 sps:$4 sm:$0xff]  }
 0x134   : > { %v4790_v38 = vld [vmem:[%s6030_s17 + $0x364] ss:$8 sps:$4 sm:$0xff]   ;;  %v4805_v53 = vld [vmem:[%s6030_s17 + $0x294] ss:$8 sps:$4 sm:$0xff]   ;;  %v4803_v55 = vld [vmem:[%s6030_s17 + $0x290] ss:$8 sps:$4 sm:$0xff]  }
 0x135   : > { %3060 = vmatpush1.bf16.msra.mxu0 %v4701_v41  ;;  %v4788_v41 = vld [vmem:[%s6030_s17 + $0x360] ss:$8 sps:$4 sm:$0xff]   ;;  %v4808_v54 = vld [vmem:[%s6030_s17 + $0x394] ss:$8 sps:$4 sm:$0xff]   ;;  %v4814_v58 = vld [vmem:[%s6030_s17 + $0x3a4] ss:$8 sps:$4 sm:$0xff]  }
 0x136   : > { %3101 = vmatpush1.bf16.msra.mxu1 %v4702_v42  ;;  %3061 = vmatprep.subr.bf16.mxu0 %v4703_v43  ;;  %v4015_v42 = vcombine.high %v6162_v39, %v6162_v39  ;;  %v6169_v43 = vld [vmem:[%s6113_s14 + $0x18] sm:$0xff] }
 0x137   : > { %3102 = vmatprep.subr.bf16.mxu1 %v4705_v44  ;;  %v4793_v44 = vld [vmem:[%s6030_s17 + $0x274] ss:$8 sps:$4 sm:$0xff]  }
 0x139   : > { %3062 = vmatpush1.bf16.msra.mxu0 %v4707_v45  ;;  %v4017_v45 = vcombine.high %v6169_v43, %v6169_v43 }
 0x13a   : > { %3103 = vmatpush1.bf16.msra.mxu1 %v4708_v46  ;;  %3063 = vmatprep.subr.bf16.mxu0 %v4709_v47  ;;  %v4796_v46 = vld [vmem:[%s6030_s17 + $0x374] ss:$8 sps:$4 sm:$0xff]   ;;  %v4791_v47 = vld [vmem:[%s6030_s17 + $0x270] ss:$8 sps:$4 sm:$0xff]  }
 0x13b   : > { %3104 = vmatprep.subr.bf16.mxu1 %v4711_v48  ;;  %v4794_v48 = vld [vmem:[%s6030_s17 + $0x370] ss:$8 sps:$4 sm:$0xff]  }
 0x13d   : > { %3064 = vmatpush1.bf16.msra.mxu0 %v4713_v49  ;;  %v4799_v49 = vld [vmem:[%s6030_s17 + $0x284] ss:$8 sps:$4 sm:$0xff]  }
 0x13e   : > { %3105 = vmatpush1.bf16.msra.mxu1 %v4714_v50  ;;  %3065 = vmatprep.subr.bf16.mxu0 %v4715_v51  ;;  %v4802_v50 = vld [vmem:[%s6030_s17 + $0x384] ss:$8 sps:$4 sm:$0xff]   ;;  %v4797_v51 = vld [vmem:[%s6030_s17 + $0x280] ss:$8 sps:$4 sm:$0xff]  }
 0x13f   : > { %3106 = vmatprep.subr.bf16.mxu1 %v4717_v52  ;;  %v4800_v52 = vld [vmem:[%s6030_s17 + $0x380] ss:$8 sps:$4 sm:$0xff]  }
 0x141   : > { %3066 = vmatpush1.bf16.msra.mxu0 %v4719_v56  ;;  %v4806_v56 = vld [vmem:[%s6030_s17 + $0x390] ss:$8 sps:$4 sm:$0xff]  }
 0x142   : > { %3107 = vmatpush1.bf16.msra.mxu1 %v4720_v57  ;;  %3067 = vmatprep.subr.bf16.mxu0 %v4721_v59  ;;  %v4811_v57 = vld [vmem:[%s6030_s17 + $0x2a4] ss:$8 sps:$4 sm:$0xff]   ;;  %v4809_v59 = vld [vmem:[%s6030_s17 + $0x2a0] ss:$8 sps:$4 sm:$0xff]  }
 0x143   : > { %3108 = vmatprep.subr.bf16.mxu1 %v4723_v60  ;;  %v4812_v60 = vld [vmem:[%s6030_s17 + $0x3a0] ss:$8 sps:$4 sm:$0xff]  }
 0x145   : > { %3068 = vmatpush1.bf16.msra.mxu0 %v4725_v61  ;;  %v4817_v61 = vld [vmem:[%s6030_s17 + $0x2b4] ss:$8 sps:$4 sm:$0xff]  }
 0x146   : > { %3109 = vmatpush1.bf16.msra.mxu1 %v4726_v62  ;;  %3069 = vmatprep.subr.bf16.mxu0 %v4727_v63  ;;  %v4820_v62 = vld [vmem:[%s6030_s17 + $0x3b4] ss:$8 sps:$4 sm:$0xff]   ;;  %v4815_v63 = vld [vmem:[%s6030_s17 + $0x2b0] ss:$8 sps:$4 sm:$0xff]  }
 0x147   : > { %3110 = vmatprep.subr.bf16.mxu1 %v4729_v0  ;;  %v4818_v0 = vld [vmem:[%s6030_s17 + $0x3b0] ss:$8 sps:$4 sm:$0xff]  }
 0x149   : > { %3070 = vmatpush1.bf16.msra.mxu0 %v4731_v1  ;;  %v4823_v1 = vld [vmem:[%s6030_s17 + $0x2c4] ss:$8 sps:$4 sm:$0xff]  }
 0x14a   : > { %3111 = vmatpush1.bf16.msra.mxu1 %v4732_v2  ;;  %3071 = vmatprep.subr.bf16.mxu0 %v4733_v3  ;;  %v4826_v2 = vld [vmem:[%s6030_s17 + $0x3c4] ss:$8 sps:$4 sm:$0xff]   ;;  %v4821_v3 = vld [vmem:[%s6030_s17 + $0x2c0] ss:$8 sps:$4 sm:$0xff]  }
 0x14b   : > { %3112 = vmatprep.subr.bf16.mxu1 %v4735_v4  ;;  %v4824_v4 = vld [vmem:[%s6030_s17 + $0x3c0] ss:$8 sps:$4 sm:$0xff]  }
 0x14d   : > { %3072 = vmatpush1.bf16.msra.mxu0 %v4737_v5  ;;  %v4829_v5 = vld [vmem:[%s6030_s17 + $0x2d4] ss:$8 sps:$4 sm:$0xff]  }
 0x14e   : > { %3113 = vmatpush1.bf16.msra.mxu1 %v4738_v6  ;;  %3073 = vmatprep.subr.bf16.mxu0 %v4739_v7  ;;  %v4832_v6 = vld [vmem:[%s6030_s17 + $0x3d4] ss:$8 sps:$4 sm:$0xff]   ;;  %v4827_v7 = vld [vmem:[%s6030_s17 + $0x2d0] ss:$8 sps:$4 sm:$0xff]  }
 0x14f   : > { %3114 = vmatprep.subr.bf16.mxu1 %v4741_v8  ;;  %v4830_v8 = vld [vmem:[%s6030_s17 + $0x3d0] ss:$8 sps:$4 sm:$0xff]  }
 0x151   : > { %3074 = vmatpush1.bf16.msra.mxu0 %v4743_v9  ;;  %v4835_v9 = vld [vmem:[%s6030_s17 + $0x2e4] ss:$8 sps:$4 sm:$0xff]  }
 0x152   : > { %3115 = vmatpush1.bf16.msra.mxu1 %v4744_v10  ;;  %3125 = vmatprep.subr.bf16.mxu0 %v4751_v11  ;;  %v4838_v10 = vld [vmem:[%s6030_s17 + $0x3e4] ss:$8 sps:$4 sm:$0xff]   ;;  %v4833_v11 = vld [vmem:[%s6030_s17 + $0x2e0] ss:$8 sps:$4 sm:$0xff]  }
 0x153   : > { %3166 = vmatprep.subr.bf16.mxu1 %v4754_v12  ;;  %v4836_v12 = vld [vmem:[%s6030_s17 + $0x3e0] ss:$8 sps:$4 sm:$0xff]  }
 0x154   : > { %3076 = vmatmul.mubr.bf16.vlgmr.msra.gmra.mrb[0].mxu0 %v4010_v13  ;;  %v4841_v13 = vld [vmem:[%s6030_s17 + $0x2f4] ss:$8 sps:$4 sm:$0xff]  }
 0x155   : > { %3117 = vmatmul.mubr.bf16.vlgmr.msra.gmra.mrb[0].mxu1 %v4012_v14  ;;  %3126 = vmatpush1.bf16.msra.mxu0 %v4749_v15  ;;  %v4844_v14 = vld [vmem:[%s6030_s17 + $0x3f4] ss:$8 sps:$4 sm:$0xff]   ;;  %v4839_v15 = vld [vmem:[%s6030_s17 + $0x2f0] ss:$8 sps:$4 sm:$0xff]  }
 0x156   : > { %3167 = vmatpush1.bf16.msra.mxu1 %v4752_v16  ;;  %3127 = vmatprep.subr.bf16.mxu0 %v4757_v17  ;;  %v4842_v16 = vld [vmem:[%s6030_s17 + $0x3f0] ss:$8 sps:$4 sm:$0xff]   ;;  %v4849_v17 = vld [vmem:[%s6030_s17 + $0x404] ss:$8 sps:$4 sm:$0xff]  }
 0x157   : > { %3168 = vmatprep.subr.bf16.mxu1 %v4760_v18  ;;  %3157 = vmatprep.mubr.bf16.mxu0 %v4015_v42  ;;  %v4854_v18 = vld [vmem:[%s6030_s17 + $0x504] ss:$8 sps:$4 sm:$0xff]   ;;  %v4876_v42 = vld [vmem:[%s6030_s17 + $0x540] ss:$8 sps:$4 sm:$0xff]  }
 0x158   : > { %3198 = vmatprep.mubr.bf16.mxu1 %v4017_v45  ;;  %v4879_v45 = vld [vmem:[%s6030_s17 + $0x450] ss:$8 sps:$4 sm:$0xff]  }
 0x159   : > { %3128 = vmatpush1.bf16.msra.mxu0 %v4755_v19  ;;  %v4014_v19 = vcombine.low %v6162_v39, %v6162_v39  ;;  %v4875_v39 = vld [vmem:[%s6030_s17 + $0x444] ss:$8 sps:$4 sm:$0xff]  }
 0x15a   : > { %3169 = vmatpush1.bf16.msra.mxu1 %v4758_v20  ;;  %3129 = vmatprep.subr.bf16.mxu0 %v4763_v21  ;;  %v4847_v20 = vld [vmem:[%s6030_s17 + $0x400] ss:$8 sps:$4 sm:$0xff]   ;;  %v4016_v21 = vcombine.low %v6169_v43, %v6169_v43  ;;  %v4881_v43 = vld [vmem:[%s6030_s17 + $0x454] ss:$8 sps:$4 sm:$0xff]  }
 0x15b   : > { %3170 = vmatprep.subr.bf16.mxu1 %v4766_v22  ;;  %v4852_v22 = vld [vmem:[%s6030_s17 + $0x500] ss:$8 sps:$4 sm:$0xff]  }
 0x15d   : > { %3130 = vmatpush1.bf16.msra.mxu0 %v4761_v23  ;;  %v4857_v23 = vld [vmem:[%s6030_s17 + $0x414] ss:$8 sps:$4 sm:$0xff]  }
 0x15e   : > { %3171 = vmatpush1.bf16.msra.mxu1 %v4764_v24  ;;  %3131 = vmatprep.subr.bf16.mxu0 %v4769_v25  ;;  %v4860_v24 = vld [vmem:[%s6030_s17 + $0x514] ss:$8 sps:$4 sm:$0xff]   ;;  %v6220_v25 = vld [vmem:[%s6113_s14 + $0x20] sm:$0xff] }
 0x15f   : > { %3172 = vmatprep.subr.bf16.mxu1 %v4772_v26  ;;  %v4019_v26 = vcombine.high %v6220_v25, %v6220_v25 }
 0x161   : > { %3132 = vmatpush1.bf16.msra.mxu0 %v4767_v27  ;;  %v6225_v27 = vld [vmem:[%s6113_s14 + $0x28] sm:$0xff] }
 0x162   : > { %3173 = vmatpush1.bf16.msra.mxu1 %v4770_v28  ;;  %3133 = vmatprep.subr.bf16.mxu0 %v4775_v29  ;;  %v4855_v28 = vld [vmem:[%s6030_s17 + $0x410] ss:$8 sps:$4 sm:$0xff]  }
 0x163   : > { %3174 = vmatprep.subr.bf16.mxu1 %v4778_v30  ;;  %v4858_v29 = vld [vmem:[%s6030_s17 + $0x510] ss:$8 sps:$4 sm:$0xff]   ;;  %v4021_v30 = vcombine.high %v6225_v27, %v6225_v27 }
 0x165   : > { %3134 = vmatpush1.bf16.msra.mxu0 %v4773_v31  ;;  %v4863_v31 = vld [vmem:[%s6030_s17 + $0x424] ss:$8 sps:$4 sm:$0xff]  }
 0x166   : > { %3175 = vmatpush1.bf16.msra.mxu1 %v4776_v32  ;;  %3135 = vmatprep.subr.bf16.mxu0 %v4781_v33  ;;  %v4866_v32 = vld [vmem:[%s6030_s17 + $0x524] ss:$8 sps:$4 sm:$0xff]   ;;  %v4861_v33 = vld [vmem:[%s6030_s17 + $0x420] ss:$8 sps:$4 sm:$0xff]  }
 0x167   : > { %3176 = vmatprep.subr.bf16.mxu1 %v4784_v34  ;;  %v4864_v34 = vld [vmem:[%s6030_s17 + $0x520] ss:$8 sps:$4 sm:$0xff]  }
 0x169   : > { %3136 = vmatpush1.bf16.msra.mxu0 %v4779_v35  ;;  %v4869_v35 = vld [vmem:[%s6030_s17 + $0x434] ss:$8 sps:$4 sm:$0xff]  }
 0x16a   : > { %3177 = vmatpush1.bf16.msra.mxu1 %v4782_v36  ;;  %3137 = vmatprep.subr.bf16.mxu0 %v4787_v37  ;;  %v4872_v36 = vld [vmem:[%s6030_s17 + $0x534] ss:$8 sps:$4 sm:$0xff]   ;;  %v4867_v37 = vld [vmem:[%s6030_s17 + $0x430] ss:$8 sps:$4 sm:$0xff]  }
 0x16b   : > { %3178 = vmatprep.subr.bf16.mxu1 %v4790_v38  ;;  %v4870_v38 = vld [vmem:[%s6030_s17 + $0x530] ss:$8 sps:$4 sm:$0xff]  }
 0x16d   : > { %3138 = vmatpush1.bf16.msra.mxu0 %v4785_v40  ;;  %v4878_v40 = vld [vmem:[%s6030_s17 + $0x544] ss:$8 sps:$4 sm:$0xff]  }
 0x16e   : > { %3179 = vmatpush1.bf16.msra.mxu1 %v4788_v41  ;;  %3139 = vmatprep.subr.bf16.mxu0 %v4793_v44  ;;  %v4873_v41 = vld [vmem:[%s6030_s17 + $0x440] ss:$8 sps:$4 sm:$0xff]   ;;  %v4884_v44 = vld [vmem:[%s6030_s17 + $0x554] ss:$8 sps:$4 sm:$0xff]  }
 0x16f   : > { %3180 = vmatprep.subr.bf16.mxu1 %v4796_v46  ;;  %v4882_v46 = vld [vmem:[%s6030_s17 + $0x550] ss:$8 sps:$4 sm:$0xff]  }
 0x171   : > { %3140 = vmatpush1.bf16.msra.mxu0 %v4791_v47  ;;  %v4887_v47 = vld [vmem:[%s6030_s17 + $0x464] ss:$8 sps:$4 sm:$0xff]  }
 0x172   : > { %3181 = vmatpush1.bf16.msra.mxu1 %v4794_v48  ;;  %3141 = vmatprep.subr.bf16.mxu0 %v4799_v49  ;;  %v4890_v48 = vld [vmem:[%s6030_s17 + $0x564] ss:$8 sps:$4 sm:$0xff]   ;;  %v4885_v49 = vld [vmem:[%s6030_s17 + $0x460] ss:$8 sps:$4 sm:$0xff]  }
 0x173   : > { %3182 = vmatprep.subr.bf16.mxu1 %v4802_v50  ;;  %v4888_v50 = vld [vmem:[%s6030_s17 + $0x560] ss:$8 sps:$4 sm:$0xff]  }
 0x175   : > { %3142 = vmatpush1.bf16.msra.mxu0 %v4797_v51  ;;  %v4893_v51 = vld [vmem:[%s6030_s17 + $0x474] ss:$8 sps:$4 sm:$0xff]  }
 0x176   : > { %3183 = vmatpush1.bf16.msra.mxu1 %v4800_v52  ;;  %3143 = vmatprep.subr.bf16.mxu0 %v4805_v53  ;;  %v4896_v52 = vld [vmem:[%s6030_s17 + $0x574] ss:$8 sps:$4 sm:$0xff]   ;;  %v4891_v53 = vld [vmem:[%s6030_s17 + $0x470] ss:$8 sps:$4 sm:$0xff]  }
 0x177   : > { %3184 = vmatprep.subr.bf16.mxu1 %v4808_v54  ;;  %v4894_v54 = vld [vmem:[%s6030_s17 + $0x570] ss:$8 sps:$4 sm:$0xff]  }
 0x179   : > { %3144 = vmatpush1.bf16.msra.mxu0 %v4803_v55  ;;  %v4899_v55 = vld [vmem:[%s6030_s17 + $0x484] ss:$8 sps:$4 sm:$0xff]  }
 0x17a   : > { %3185 = vmatpush1.bf16.msra.mxu1 %v4806_v56  ;;  %3145 = vmatprep.subr.bf16.mxu0 %v4811_v57  ;;  %v4902_v56 = vld [vmem:[%s6030_s17 + $0x584] ss:$8 sps:$4 sm:$0xff]   ;;  %v4897_v57 = vld [vmem:[%s6030_s17 + $0x480] ss:$8 sps:$4 sm:$0xff]  }
 0x17b   : > { %3186 = vmatprep.subr.bf16.mxu1 %v4814_v58  ;;  %v4900_v58 = vld [vmem:[%s6030_s17 + $0x580] ss:$8 sps:$4 sm:$0xff]  }
 0x17d   : > { %3146 = vmatpush1.bf16.msra.mxu0 %v4809_v59  ;;  %v4905_v59 = vld [vmem:[%s6030_s17 + $0x494] ss:$8 sps:$4 sm:$0xff]  }
 0x17e   : > { %3187 = vmatpush1.bf16.msra.mxu1 %v4812_v60  ;;  %3147 = vmatprep.subr.bf16.mxu0 %v4817_v61  ;;  %v4908_v60 = vld [vmem:[%s6030_s17 + $0x594] ss:$8 sps:$4 sm:$0xff]   ;;  %v4903_v61 = vld [vmem:[%s6030_s17 + $0x490] ss:$8 sps:$4 sm:$0xff]  }
 0x17f   : > { %3188 = vmatprep.subr.bf16.mxu1 %v4820_v62  ;;  %v4906_v62 = vld [vmem:[%s6030_s17 + $0x590] ss:$8 sps:$4 sm:$0xff]  }
 0x181   : > { %3148 = vmatpush1.bf16.msra.mxu0 %v4815_v63  ;;  %v4911_v63 = vld [vmem:[%s6030_s17 + $0x4a4] ss:$8 sps:$4 sm:$0xff]  }
 0x182   : > { %3189 = vmatpush1.bf16.msra.mxu1 %v4818_v0  ;;  %3149 = vmatprep.subr.bf16.mxu0 %v4823_v1  ;;  %v4914_v0 = vld [vmem:[%s6030_s17 + $0x5a4] ss:$8 sps:$4 sm:$0xff]   ;;  %v4909_v1 = vld [vmem:[%s6030_s17 + $0x4a0] ss:$8 sps:$4 sm:$0xff]  }
 0x183   : > { %3190 = vmatprep.subr.bf16.mxu1 %v4826_v2  ;;  %v4912_v2 = vld [vmem:[%s6030_s17 + $0x5a0] ss:$8 sps:$4 sm:$0xff]  }
 0x185   : > { %3150 = vmatpush1.bf16.msra.mxu0 %v4821_v3  ;;  %v4917_v3 = vld [vmem:[%s6030_s17 + $0x4b4] ss:$8 sps:$4 sm:$0xff]  }
 0x186   : > { %3191 = vmatpush1.bf16.msra.mxu1 %v4824_v4  ;;  %3151 = vmatprep.subr.bf16.mxu0 %v4829_v5  ;;  %v4920_v4 = vld [vmem:[%s6030_s17 + $0x5b4] ss:$8 sps:$4 sm:$0xff]   ;;  %v4915_v5 = vld [vmem:[%s6030_s17 + $0x4b0] ss:$8 sps:$4 sm:$0xff]  }
 0x187   : > { %3192 = vmatprep.subr.bf16.mxu1 %v4832_v6  ;;  %v4918_v6 = vld [vmem:[%s6030_s17 + $0x5b0] ss:$8 sps:$4 sm:$0xff]  }
 0x189   : > { %3152 = vmatpush1.bf16.msra.mxu0 %v4827_v7  ;;  %v4923_v7 = vld [vmem:[%s6030_s17 + $0x4c4] ss:$8 sps:$4 sm:$0xff]  }
 0x18a   : > { %3193 = vmatpush1.bf16.msra.mxu1 %v4830_v8  ;;  %3153 = vmatprep.subr.bf16.mxu0 %v4835_v9  ;;  %v4926_v8 = vld [vmem:[%s6030_s17 + $0x5c4] ss:$8 sps:$4 sm:$0xff]   ;;  %v4921_v9 = vld [vmem:[%s6030_s17 + $0x4c0] ss:$8 sps:$4 sm:$0xff]  }
 0x18b   : > { %3194 = vmatprep.subr.bf16.mxu1 %v4838_v10  ;;  %v4924_v10 = vld [vmem:[%s6030_s17 + $0x5c0] ss:$8 sps:$4 sm:$0xff]  }
 0x18d   : > { %3154 = vmatpush1.bf16.msra.mxu0 %v4833_v11  ;;  %v4929_v11 = vld [vmem:[%s6030_s17 + $0x4d4] ss:$8 sps:$4 sm:$0xff]  }
 0x18e   : > { %3195 = vmatpush1.bf16.msra.mxu1 %v4836_v12  ;;  %3155 = vmatprep.subr.bf16.mxu0 %v4841_v13  ;;  %v4932_v12 = vld [vmem:[%s6030_s17 + $0x5d4] ss:$8 sps:$4 sm:$0xff]   ;;  %v4927_v13 = vld [vmem:[%s6030_s17 + $0x4d0] ss:$8 sps:$4 sm:$0xff]  }
 0x18f   : > { %3196 = vmatprep.subr.bf16.mxu1 %v4844_v14  ;;  %v4930_v14 = vld [vmem:[%s6030_s17 + $0x5d0] ss:$8 sps:$4 sm:$0xff]  }
 0x191   : > { %3156 = vmatpush1.bf16.msra.mxu0 %v4839_v15  ;;  %v4935_v15 = vld [vmem:[%s6030_s17 + $0x4e4] ss:$8 sps:$4 sm:$0xff]  }
 0x192   : > { %3197 = vmatpush1.bf16.msra.mxu1 %v4842_v16  ;;  %3207 = vmatprep.subr.bf16.mxu0 %v4849_v17  ;;  %v4938_v16 = vld [vmem:[%s6030_s17 + $0x5e4] ss:$8 sps:$4 sm:$0xff]   ;;  %v4933_v17 = vld [vmem:[%s6030_s17 + $0x4e0] ss:$8 sps:$4 sm:$0xff]  }
 0x193   : > { %3248 = vmatprep.subr.bf16.mxu1 %v4854_v18  ;;  %v4936_v18 = vld [vmem:[%s6030_s17 + $0x5e0] ss:$8 sps:$4 sm:$0xff]  }
 0x194   : > { %3158 = vmatmul.mubr.bf16.vlgmr.msra.gmra.mrb[4].mxu0 %v4014_v19  ;;  %v4941_v19 = vld [vmem:[%s6030_s17 + $0x4f4] ss:$8 sps:$4 sm:$0xff]  }
 0x195   : > { %3199 = vmatmul.mubr.bf16.vlgmr.msra.gmra.mrb[4].mxu1 %v4016_v21  ;;  %3208 = vmatpush1.bf16.msra.mxu0 %v4847_v20  ;;  %v4944_v20 = vld [vmem:[%s6030_s17 + $0x5f4] ss:$8 sps:$4 sm:$0xff]   ;;  %v4939_v21 = vld [vmem:[%s6030_s17 + $0x4f0] ss:$8 sps:$4 sm:$0xff]  }
 0x196   : > { %3249 = vmatpush1.bf16.msra.mxu1 %v4852_v22  ;;  %3209 = vmatprep.subr.bf16.mxu0 %v4857_v23  ;;  %v4942_v22 = vld [vmem:[%s6030_s17 + $0x5f0] ss:$8 sps:$4 sm:$0xff]   ;;  %v4949_v23 = vld [vmem:[%s6030_s17 + $0x604] ss:$8 sps:$4 sm:$0xff]  }
 0x197   : > { %3250 = vmatprep.subr.bf16.mxu1 %v4860_v24  ;;  %3239 = vmatprep.mubr.bf16.mxu0 %v4019_v26  ;;  %v4954_v24 = vld [vmem:[%s6030_s17 + $0x704] ss:$8 sps:$4 sm:$0xff]   ;;  %v4947_v26 = vld [vmem:[%s6030_s17 + $0x600] ss:$8 sps:$4 sm:$0xff]  }
 0x198   : > { %3280 = vmatprep.mubr.bf16.mxu1 %v4021_v30  ;;  %v4020_v30 = vcombine.low %v6225_v27, %v6225_v27 }
 0x199   : > { %3210 = vmatpush1.bf16.msra.mxu0 %v4855_v28  ;;  %v4952_v28 = vld [vmem:[%s6030_s17 + $0x700] ss:$8 sps:$4 sm:$0xff]  }
 0x19a   : > { %3251 = vmatpush1.bf16.msra.mxu1 %v4858_v29  ;;  %3211 = vmatprep.subr.bf16.mxu0 %v4863_v31  ;;  %v4018_v29 = vcombine.low %v6220_v25, %v6220_v25  ;;  %v6296_v31 = vld [vmem:[%s6113_s14 + $0x30] sm:$0xff] }
 0x19b   : > { %3252 = vmatprep.subr.bf16.mxu1 %v4866_v32  ;;  %v6299_v32 = vld [vmem:[%s6113_s14 + $0x38] sm:$0xff]  ;;  %v4023_v25 = vcombine.high %v6296_v31, %v6296_v31 }
 0x19c   : > { %v4025_v27 = vcombine.high %v6299_v32, %v6299_v32 }
 0x19d   : > { %3212 = vmatpush1.bf16.msra.mxu0 %v4861_v33  ;;  %v4957_v33 = vld [vmem:[%s6030_s17 + $0x614] ss:$8 sps:$4 sm:$0xff]  }
 0x19e   : > { %3253 = vmatpush1.bf16.msra.mxu1 %v4864_v34  ;;  %3213 = vmatprep.subr.bf16.mxu0 %v4869_v35  ;;  %v4960_v34 = vld [vmem:[%s6030_s17 + $0x714] ss:$8 sps:$4 sm:$0xff]   ;;  %v4955_v35 = vld [vmem:[%s6030_s17 + $0x610] ss:$8 sps:$4 sm:$0xff]  }
 0x19f   : > { %3254 = vmatprep.subr.bf16.mxu1 %v4872_v36  ;;  %v4958_v36 = vld [vmem:[%s6030_s17 + $0x710] ss:$8 sps:$4 sm:$0xff]  }
 0x1a1   : > { %3214 = vmatpush1.bf16.msra.mxu0 %v4867_v37  ;;  %v4963_v37 = vld [vmem:[%s6030_s17 + $0x624] ss:$8 sps:$4 sm:$0xff]  }
 0x1a2   : > { %3255 = vmatpush1.bf16.msra.mxu1 %v4870_v38  ;;  %3215 = vmatprep.subr.bf16.mxu0 %v4875_v39  ;;  %v4966_v38 = vld [vmem:[%s6030_s17 + $0x724] ss:$8 sps:$4 sm:$0xff]   ;;  %v4961_v39 = vld [vmem:[%s6030_s17 + $0x620] ss:$8 sps:$4 sm:$0xff]  }
 0x1a3   : > { %3256 = vmatprep.subr.bf16.mxu1 %v4878_v40  ;;  %v4964_v40 = vld [vmem:[%s6030_s17 + $0x720] ss:$8 sps:$4 sm:$0xff]  }
 0x1a5   : > { %3216 = vmatpush1.bf16.msra.mxu0 %v4873_v41  ;;  %v4969_v41 = vld [vmem:[%s6030_s17 + $0x634] ss:$8 sps:$4 sm:$0xff]  }
 0x1a6   : > { %3257 = vmatpush1.bf16.msra.mxu1 %v4876_v42  ;;  %3217 = vmatprep.subr.bf16.mxu0 %v4881_v43  ;;  %v4972_v42 = vld [vmem:[%s6030_s17 + $0x734] ss:$8 sps:$4 sm:$0xff]   ;;  %v4967_v43 = vld [vmem:[%s6030_s17 + $0x630] ss:$8 sps:$4 sm:$0xff]  }
 0x1a7   : > { %3258 = vmatprep.subr.bf16.mxu1 %v4884_v44  ;;  %v4970_v44 = vld [vmem:[%s6030_s17 + $0x730] ss:$8 sps:$4 sm:$0xff]  }
 0x1a9   : > { %3218 = vmatpush1.bf16.msra.mxu0 %v4879_v45  ;;  %v4975_v45 = vld [vmem:[%s6030_s17 + $0x644] ss:$8 sps:$4 sm:$0xff]  }
 0x1aa   : > { %3259 = vmatpush1.bf16.msra.mxu1 %v4882_v46  ;;  %3219 = vmatprep.subr.bf16.mxu0 %v4887_v47  ;;  %v4978_v46 = vld [vmem:[%s6030_s17 + $0x744] ss:$8 sps:$4 sm:$0xff]   ;;  %v4973_v47 = vld [vmem:[%s6030_s17 + $0x640] ss:$8 sps:$4 sm:$0xff]  }
 0x1ab   : > { %3260 = vmatprep.subr.bf16.mxu1 %v4890_v48  ;;  %v4976_v48 = vld [vmem:[%s6030_s17 + $0x740] ss:$8 sps:$4 sm:$0xff]  }
 0x1ad   : > { %3220 = vmatpush1.bf16.msra.mxu0 %v4885_v49  ;;  %v4981_v49 = vld [vmem:[%s6030_s17 + $0x654] ss:$8 sps:$4 sm:$0xff]  }
 0x1ae   : > { %3261 = vmatpush1.bf16.msra.mxu1 %v4888_v50  ;;  %3221 = vmatprep.subr.bf16.mxu0 %v4893_v51  ;;  %v4984_v50 = vld [vmem:[%s6030_s17 + $0x754] ss:$8 sps:$4 sm:$0xff]   ;;  %v4979_v51 = vld [vmem:[%s6030_s17 + $0x650] ss:$8 sps:$4 sm:$0xff]  }
 0x1af   : > { %3262 = vmatprep.subr.bf16.mxu1 %v4896_v52  ;;  %v4982_v52 = vld [vmem:[%s6030_s17 + $0x750] ss:$8 sps:$4 sm:$0xff]  }
 0x1b1   : > { %3222 = vmatpush1.bf16.msra.mxu0 %v4891_v53  ;;  %v4987_v53 = vld [vmem:[%s6030_s17 + $0x664] ss:$8 sps:$4 sm:$0xff]  }
 0x1b2   : > { %3263 = vmatpush1.bf16.msra.mxu1 %v4894_v54  ;;  %3223 = vmatprep.subr.bf16.mxu0 %v4899_v55  ;;  %v4990_v54 = vld [vmem:[%s6030_s17 + $0x764] ss:$8 sps:$4 sm:$0xff]   ;;  %v4985_v55 = vld [vmem:[%s6030_s17 + $0x660] ss:$8 sps:$4 sm:$0xff]  }
 0x1b3   : > { %3264 = vmatprep.subr.bf16.mxu1 %v4902_v56  ;;  %v4988_v56 = vld [vmem:[%s6030_s17 + $0x760] ss:$8 sps:$4 sm:$0xff]  }
 0x1b5   : > { %3224 = vmatpush1.bf16.msra.mxu0 %v4897_v57  ;;  %v4993_v57 = vld [vmem:[%s6030_s17 + $0x674] ss:$8 sps:$4 sm:$0xff]  }
 0x1b6   : > { %3265 = vmatpush1.bf16.msra.mxu1 %v4900_v58  ;;  %3225 = vmatprep.subr.bf16.mxu0 %v4905_v59  ;;  %v4996_v58 = vld [vmem:[%s6030_s17 + $0x774] ss:$8 sps:$4 sm:$0xff]   ;;  %v4991_v59 = vld [vmem:[%s6030_s17 + $0x670] ss:$8 sps:$4 sm:$0xff]  }
 0x1b7   : > { %3266 = vmatprep.subr.bf16.mxu1 %v4908_v60  ;;  %v4994_v60 = vld [vmem:[%s6030_s17 + $0x770] ss:$8 sps:$4 sm:$0xff]  }
 0x1b9   : > { %3226 = vmatpush1.bf16.msra.mxu0 %v4903_v61  ;;  %v4999_v61 = vld [vmem:[%s6030_s17 + $0x684] ss:$8 sps:$4 sm:$0xff]  }
 0x1ba   : > { %3267 = vmatpush1.bf16.msra.mxu1 %v4906_v62  ;;  %3227 = vmatprep.subr.bf16.mxu0 %v4911_v63  ;;  %v5002_v62 = vld [vmem:[%s6030_s17 + $0x784] ss:$8 sps:$4 sm:$0xff]   ;;  %v4997_v63 = vld [vmem:[%s6030_s17 + $0x680] ss:$8 sps:$4 sm:$0xff]  }
 0x1bb   : > { %3268 = vmatprep.subr.bf16.mxu1 %v4914_v0  ;;  %v5000_v0 = vld [vmem:[%s6030_s17 + $0x780] ss:$8 sps:$4 sm:$0xff]  }
 0x1bd   : > { %3228 = vmatpush1.bf16.msra.mxu0 %v4909_v1  ;;  %v5005_v1 = vld [vmem:[%s6030_s17 + $0x694] ss:$8 sps:$4 sm:$0xff]  }
 0x1be   : > { %3269 = vmatpush1.bf16.msra.mxu1 %v4912_v2  ;;  %3229 = vmatprep.subr.bf16.mxu0 %v4917_v3  ;;  %v5008_v2 = vld [vmem:[%s6030_s17 + $0x794] ss:$8 sps:$4 sm:$0xff]   ;;  %v5003_v3 = vld [vmem:[%s6030_s17 + $0x690] ss:$8 sps:$4 sm:$0xff]  }
 0x1bf   : > { %3270 = vmatprep.subr.bf16.mxu1 %v4920_v4  ;;  %v5006_v4 = vld [vmem:[%s6030_s17 + $0x790] ss:$8 sps:$4 sm:$0xff]  }
 0x1c1   : > { %3230 = vmatpush1.bf16.msra.mxu0 %v4915_v5  ;;  %v5011_v5 = vld [vmem:[%s6030_s17 + $0x6a4] ss:$8 sps:$4 sm:$0xff]  }
 0x1c2   : > { %3271 = vmatpush1.bf16.msra.mxu1 %v4918_v6  ;;  %3231 = vmatprep.subr.bf16.mxu0 %v4923_v7  ;;  %v5014_v6 = vld [vmem:[%s6030_s17 + $0x7a4] ss:$8 sps:$4 sm:$0xff]   ;;  %v5009_v7 = vld [vmem:[%s6030_s17 + $0x6a0] ss:$8 sps:$4 sm:$0xff]  }
 0x1c3   : > { %3272 = vmatprep.subr.bf16.mxu1 %v4926_v8  ;;  %v5012_v8 = vld [vmem:[%s6030_s17 + $0x7a0] ss:$8 sps:$4 sm:$0xff]  }
 0x1c5   : > { %3232 = vmatpush1.bf16.msra.mxu0 %v4921_v9  ;;  %v5017_v9 = vld [vmem:[%s6030_s17 + $0x6b4] ss:$8 sps:$4 sm:$0xff]  }
 0x1c6   : > { %3273 = vmatpush1.bf16.msra.mxu1 %v4924_v10  ;;  %3233 = vmatprep.subr.bf16.mxu0 %v4929_v11  ;;  %v5020_v10 = vld [vmem:[%s6030_s17 + $0x7b4] ss:$8 sps:$4 sm:$0xff]   ;;  %v5015_v11 = vld [vmem:[%s6030_s17 + $0x6b0] ss:$8 sps:$4 sm:$0xff]  }
 0x1c7   : > { %3274 = vmatprep.subr.bf16.mxu1 %v4932_v12  ;;  %v5018_v12 = vld [vmem:[%s6030_s17 + $0x7b0] ss:$8 sps:$4 sm:$0xff]  }
 0x1c9   : > { %3234 = vmatpush1.bf16.msra.mxu0 %v4927_v13  ;;  %v5023_v13 = vld [vmem:[%s6030_s17 + $0x6c4] ss:$8 sps:$4 sm:$0xff]  }
 0x1ca   : > { %3275 = vmatpush1.bf16.msra.mxu1 %v4930_v14  ;;  %3235 = vmatprep.subr.bf16.mxu0 %v4935_v15  ;;  %v5026_v14 = vld [vmem:[%s6030_s17 + $0x7c4] ss:$8 sps:$4 sm:$0xff]   ;;  %v5021_v15 = vld [vmem:[%s6030_s17 + $0x6c0] ss:$8 sps:$4 sm:$0xff]  }
 0x1cb   : > { %3276 = vmatprep.subr.bf16.mxu1 %v4938_v16  ;;  %v5024_v16 = vld [vmem:[%s6030_s17 + $0x7c0] ss:$8 sps:$4 sm:$0xff]  }
 0x1cd   : > { %3236 = vmatpush1.bf16.msra.mxu0 %v4933_v17  ;;  %v5029_v17 = vld [vmem:[%s6030_s17 + $0x6d4] ss:$8 sps:$4 sm:$0xff]  }
 0x1ce   : > { %3277 = vmatpush1.bf16.msra.mxu1 %v4936_v18  ;;  %3237 = vmatprep.subr.bf16.mxu0 %v4941_v19  ;;  %v5032_v18 = vld [vmem:[%s6030_s17 + $0x7d4] ss:$8 sps:$4 sm:$0xff]   ;;  %v5027_v19 = vld [vmem:[%s6030_s17 + $0x6d0] ss:$8 sps:$4 sm:$0xff]  }
 0x1cf   : > { %3278 = vmatprep.subr.bf16.mxu1 %v4944_v20  ;;  %v5030_v20 = vld [vmem:[%s6030_s17 + $0x7d0] ss:$8 sps:$4 sm:$0xff]  }
 0x1d1   : > { %3238 = vmatpush1.bf16.msra.mxu0 %v4939_v21  ;;  %v5035_v21 = vld [vmem:[%s6030_s17 + $0x6e4] ss:$8 sps:$4 sm:$0xff]  }
 0x1d2   : > { %3279 = vmatpush1.bf16.msra.mxu1 %v4942_v22  ;;  %3289 = vmatprep.subr.bf16.mxu0 %v4949_v23  ;;  %v5038_v22 = vld [vmem:[%s6030_s17 + $0x7e4] ss:$8 sps:$4 sm:$0xff]   ;;  %v5033_v23 = vld [vmem:[%s6030_s17 + $0x6e0] ss:$8 sps:$4 sm:$0xff]  }
 0x1d3   : > { %3330 = vmatprep.subr.bf16.mxu1 %v4954_v24  ;;  %v5036_v24 = vld [vmem:[%s6030_s17 + $0x7e0] ss:$8 sps:$4 sm:$0xff]  }
 0x1d4   : > { %3240 = vmatmul.mubr.bf16.vlgmr.msra.gmra.mrb[8].mxu0 %v4018_v29  ;;  %v5039_v29 = vld [vmem:[%s6030_s17 + $0x6f0] ss:$8 sps:$4 sm:$0xff]  }
 0x1d5   : > { %3281 = vmatmul.mubr.bf16.vlgmr.msra.gmra.mrb[8].mxu1 %v4020_v30  ;;  %3290 = vmatpush1.bf16.msra.mxu0 %v4947_v26  ;;  %v5041_v26 = vld [vmem:[%s6030_s17 + $0x6f4] ss:$8 sps:$4 sm:$0xff]   ;;  %v5042_v30 = vld [vmem:[%s6030_s17 + $0x7f0] ss:$8 sps:$4 sm:$0xff]  }
 0x1d6   : > { %3331 = vmatpush1.bf16.msra.mxu1 %v4952_v28  ;;  %3291 = vmatprep.subr.bf16.mxu0 %v4957_v33  ;;  %v5044_v28 = vld [vmem:[%s6030_s17 + $0x7f4] ss:$8 sps:$4 sm:$0xff]   ;;  %v5049_v33 = vld [vmem:[%s6030_s17 + $0x804] ss:$8 sps:$4 sm:$0xff]  }
 0x1d7   : > { %3332 = vmatprep.subr.bf16.mxu1 %v4960_v34  ;;  %3321 = vmatprep.mubr.bf16.mxu0 %v4023_v25  ;;  %v5054_v34 = vld [vmem:[%s6030_s17 + $0x904] ss:$8 sps:$4 sm:$0xff]  }
 0x1d8   : > { %3362 = vmatprep.mubr.bf16.mxu1 %v4025_v27  ;;  %v6368_v25 = vld [vmem:[%s6113_s14 + $0x40] sm:$0xff]  ;;  %v4022_v27 = vcombine.low %v6296_v31, %v6296_v31 }
 0x1d9   : > { %3292 = vmatpush1.bf16.msra.mxu0 %v4955_v35  ;;  %v4024_v35 = vcombine.low %v6299_v32, %v6299_v32  ;;  %v4027_v31 = vcombine.high %v6368_v25, %v6368_v25 }
 0x1da   : > { %3333 = vmatpush1.bf16.msra.mxu1 %v4958_v36  ;;  %3293 = vmatprep.subr.bf16.mxu0 %v4963_v37  ;;  %v6375_v36 = vld [vmem:[%s6113_s14 + $0x48] sm:$0xff]  ;;  %v5047_v37 = vld [vmem:[%s6030_s17 + $0x800] ss:$8 sps:$4 sm:$0xff]  }
 0x1db   : > { %3334 = vmatprep.subr.bf16.mxu1 %v4966_v38  ;;  %v5052_v38 = vld [vmem:[%s6030_s17 + $0x900] ss:$8 sps:$4 sm:$0xff]   ;;  %v4029_v32 = vcombine.high %v6375_v36, %v6375_v36 }
 0x1dd   : > { %3294 = vmatpush1.bf16.msra.mxu0 %v4961_v39  ;;  %v5057_v39 = vld [vmem:[%s6030_s17 + $0x814] ss:$8 sps:$4 sm:$0xff]  }
 0x1de   : > { %3335 = vmatpush1.bf16.msra.mxu1 %v4964_v40  ;;  %3295 = vmatprep.subr.bf16.mxu0 %v4969_v41  ;;  %v5060_v40 = vld [vmem:[%s6030_s17 + $0x914] ss:$8 sps:$4 sm:$0xff]   ;;  %v5055_v41 = vld [vmem:[%s6030_s17 + $0x810] ss:$8 sps:$4 sm:$0xff]  }
 0x1df   : > { %3336 = vmatprep.subr.bf16.mxu1 %v4972_v42  ;;  %v5058_v42 = vld [vmem:[%s6030_s17 + $0x910] ss:$8 sps:$4 sm:$0xff]  }
 0x1e1   : > { %3296 = vmatpush1.bf16.msra.mxu0 %v4967_v43  ;;  %v5063_v43 = vld [vmem:[%s6030_s17 + $0x824] ss:$8 sps:$4 sm:$0xff]  }
 0x1e2   : > { %3337 = vmatpush1.bf16.msra.mxu1 %v4970_v44  ;;  %3297 = vmatprep.subr.bf16.mxu0 %v4975_v45  ;;  %v5066_v44 = vld [vmem:[%s6030_s17 + $0x924] ss:$8 sps:$4 sm:$0xff]   ;;  %v5061_v45 = vld [vmem:[%s6030_s17 + $0x820] ss:$8 sps:$4 sm:$0xff]  }
 0x1e3   : > { %3338 = vmatprep.subr.bf16.mxu1 %v4978_v46  ;;  %v5064_v46 = vld [vmem:[%s6030_s17 + $0x920] ss:$8 sps:$4 sm:$0xff]  }
 0x1e5   : > { %3298 = vmatpush1.bf16.msra.mxu0 %v4973_v47  ;;  %v5069_v47 = vld [vmem:[%s6030_s17 + $0x834] ss:$8 sps:$4 sm:$0xff]  }
 0x1e6   : > { %3339 = vmatpush1.bf16.msra.mxu1 %v4976_v48  ;;  %3299 = vmatprep.subr.bf16.mxu0 %v4981_v49  ;;  %v5072_v48 = vld [vmem:[%s6030_s17 + $0x934] ss:$8 sps:$4 sm:$0xff]   ;;  %v5067_v49 = vld [vmem:[%s6030_s17 + $0x830] ss:$8 sps:$4 sm:$0xff]  }
 0x1e7   : > { %3340 = vmatprep.subr.bf16.mxu1 %v4984_v50  ;;  %v5070_v50 = vld [vmem:[%s6030_s17 + $0x930] ss:$8 sps:$4 sm:$0xff]  }
 0x1e9   : > { %3300 = vmatpush1.bf16.msra.mxu0 %v4979_v51  ;;  %v5075_v51 = vld [vmem:[%s6030_s17 + $0x844] ss:$8 sps:$4 sm:$0xff]  }
 0x1ea   : > { %3341 = vmatpush1.bf16.msra.mxu1 %v4982_v52  ;;  %3301 = vmatprep.subr.bf16.mxu0 %v4987_v53  ;;  %v5078_v52 = vld [vmem:[%s6030_s17 + $0x944] ss:$8 sps:$4 sm:$0xff]   ;;  %v5073_v53 = vld [vmem:[%s6030_s17 + $0x840] ss:$8 sps:$4 sm:$0xff]  }
 0x1eb   : > { %3342 = vmatprep.subr.bf16.mxu1 %v4990_v54  ;;  %v5076_v54 = vld [vmem:[%s6030_s17 + $0x940] ss:$8 sps:$4 sm:$0xff]  }
 0x1ed   : > { %3302 = vmatpush1.bf16.msra.mxu0 %v4985_v55  ;;  %v5081_v55 = vld [vmem:[%s6030_s17 + $0x854] ss:$8 sps:$4 sm:$0xff]  }
 0x1ee   : > { %3343 = vmatpush1.bf16.msra.mxu1 %v4988_v56  ;;  %3303 = vmatprep.subr.bf16.mxu0 %v4993_v57  ;;  %v5084_v56 = vld [vmem:[%s6030_s17 + $0x954] ss:$8 sps:$4 sm:$0xff]   ;;  %v5079_v57 = vld [vmem:[%s6030_s17 + $0x850] ss:$8 sps:$4 sm:$0xff]  }
 0x1ef   : > { %3344 = vmatprep.subr.bf16.mxu1 %v4996_v58  ;;  %v5082_v58 = vld [vmem:[%s6030_s17 + $0x950] ss:$8 sps:$4 sm:$0xff]  }
 0x1f1   : > { %3304 = vmatpush1.bf16.msra.mxu0 %v4991_v59  ;;  %v5087_v59 = vld [vmem:[%s6030_s17 + $0x864] ss:$8 sps:$4 sm:$0xff]  }
 0x1f2   : > { %3345 = vmatpush1.bf16.msra.mxu1 %v4994_v60  ;;  %3305 = vmatprep.subr.bf16.mxu0 %v4999_v61  ;;  %v5090_v60 = vld [vmem:[%s6030_s17 + $0x964] ss:$8 sps:$4 sm:$0xff]  }
 0x1f3   : > { %3346 = vmatprep.subr.bf16.mxu1 %v5002_v62 }
 0x1f5   : > { %3306 = vmatpush1.bf16.msra.mxu0 %v4997_v63 }
 0x1f6   : > { %3347 = vmatpush1.bf16.msra.mxu1 %v5000_v0  ;;  %3307 = vmatprep.subr.bf16.mxu0 %v5005_v1 }
 0x1f7   : > { %3348 = vmatprep.subr.bf16.mxu1 %v5008_v2 }
 0x1f9   : > { %3308 = vmatpush1.bf16.msra.mxu0 %v5003_v3 }
 0x1fa   : > { %3349 = vmatpush1.bf16.msra.mxu1 %v5006_v4  ;;  %3309 = vmatprep.subr.bf16.mxu0 %v5011_v5  ;;  %v5085_v4 = vld [vmem:[%s6030_s17 + $0x860] ss:$8 sps:$4 sm:$0xff]  }
 0x1fb   : > { %3350 = vmatprep.subr.bf16.mxu1 %v5014_v6  ;;  %v5088_v5 = vld [vmem:[%s6030_s17 + $0x960] ss:$8 sps:$4 sm:$0xff]  }
 0x1fd   : > { %3310 = vmatpush1.bf16.msra.mxu0 %v5009_v7 }
 0x1fe   : > { %3351 = vmatpush1.bf16.msra.mxu1 %v5012_v8  ;;  %3311 = vmatprep.subr.bf16.mxu0 %v5017_v9  ;;  %v5093_v8 = vld [vmem:[%s6030_s17 + $0x874] ss:$8 sps:$4 sm:$0xff]  }
 0x1ff   : > { %3352 = vmatprep.subr.bf16.mxu1 %v5020_v10  ;;  %v5096_v9 = vld [vmem:[%s6030_s17 + $0x974] ss:$8 sps:$4 sm:$0xff]  }
 0x201   : > { %3312 = vmatpush1.bf16.msra.mxu0 %v5015_v11  ;;  %v5091_v11 = vld [vmem:[%s6030_s17 + $0x870] ss:$8 sps:$4 sm:$0xff]  }
 0x202   : > { %3353 = vmatpush1.bf16.msra.mxu1 %v5018_v12  ;;  %3313 = vmatprep.subr.bf16.mxu0 %v5023_v13  ;;  %v5094_v12 = vld [vmem:[%s6030_s17 + $0x970] ss:$8 sps:$4 sm:$0xff]   ;;  %v5099_v13 = vld [vmem:[%s6030_s17 + $0x884] ss:$8 sps:$4 sm:$0xff]  }
 0x203   : > { %3354 = vmatprep.subr.bf16.mxu1 %v5026_v14  ;;  %v5102_v14 = vld [vmem:[%s6030_s17 + $0x984] ss:$8 sps:$4 sm:$0xff]  }
 0x205   : > { %3314 = vmatpush1.bf16.msra.mxu0 %v5021_v15  ;;  %v5097_v15 = vld [vmem:[%s6030_s17 + $0x880] ss:$8 sps:$4 sm:$0xff]  }
 0x206   : > { %3355 = vmatpush1.bf16.msra.mxu1 %v5024_v16  ;;  %3315 = vmatprep.subr.bf16.mxu0 %v5029_v17  ;;  %v5100_v16 = vld [vmem:[%s6030_s17 + $0x980] ss:$8 sps:$4 sm:$0xff]   ;;  %v5105_v17 = vld [vmem:[%s6030_s17 + $0x894] ss:$8 sps:$4 sm:$0xff]  }
 0x207   : > { %3356 = vmatprep.subr.bf16.mxu1 %v5032_v18  ;;  %v5108_v18 = vld [vmem:[%s6030_s17 + $0x994] ss:$8 sps:$4 sm:$0xff]  }
 0x209   : > { %3316 = vmatpush1.bf16.msra.mxu0 %v5027_v19  ;;  %v5103_v19 = vld [vmem:[%s6030_s17 + $0x890] ss:$8 sps:$4 sm:$0xff]  }
 0x20a   : > { %3357 = vmatpush1.bf16.msra.mxu1 %v5030_v20  ;;  %3317 = vmatprep.subr.bf16.mxu0 %v5035_v21  ;;  %v5106_v20 = vld [vmem:[%s6030_s17 + $0x990] ss:$8 sps:$4 sm:$0xff]   ;;  %v5111_v21 = vld [vmem:[%s6030_s17 + $0x8a4] ss:$8 sps:$4 sm:$0xff]  }
 0x20b   : > { %3358 = vmatprep.subr.bf16.mxu1 %v5038_v22  ;;  %v5114_v22 = vld [vmem:[%s6030_s17 + $0x9a4] ss:$8 sps:$4 sm:$0xff]  }
 0x20d   : > { %3318 = vmatpush1.bf16.msra.mxu0 %v5033_v23  ;;  %v5109_v23 = vld [vmem:[%s6030_s17 + $0x8a0] ss:$8 sps:$4 sm:$0xff]  }
 0x20e   : > { %3359 = vmatpush1.bf16.msra.mxu1 %v5036_v24  ;;  %3319 = vmatprep.subr.bf16.mxu0 %v5041_v26  ;;  %v5112_v24 = vld [vmem:[%s6030_s17 + $0x9a0] ss:$8 sps:$4 sm:$0xff]   ;;  %v5117_v26 = vld [vmem:[%s6030_s17 + $0x8b4] ss:$8 sps:$4 sm:$0xff]  }
 0x20f   : > { %3360 = vmatprep.subr.bf16.mxu1 %v5044_v28  ;;  %v5120_v28 = vld [vmem:[%s6030_s17 + $0x9b4] ss:$8 sps:$4 sm:$0xff]  }
 0x211   : > { %3320 = vmatpush1.bf16.msra.mxu0 %v5039_v29  ;;  %v5115_v29 = vld [vmem:[%s6030_s17 + $0x8b0] ss:$8 sps:$4 sm:$0xff]  }
 0x212   : > { %3361 = vmatpush1.bf16.msra.mxu1 %v5042_v30  ;;  %3371 = vmatprep.subr.bf16.mxu0 %v5049_v33  ;;  %v5118_v30 = vld [vmem:[%s6030_s17 + $0x9b0] ss:$8 sps:$4 sm:$0xff]   ;;  %v5123_v33 = vld [vmem:[%s6030_s17 + $0x8c4] ss:$8 sps:$4 sm:$0xff]  }
 0x213   : > { %3412 = vmatprep.subr.bf16.mxu1 %v5054_v34  ;;  %v5126_v34 = vld [vmem:[%s6030_s17 + $0x9c4] ss:$8 sps:$4 sm:$0xff]  }
 0x214   : > { %3322 = vmatmul.mubr.bf16.vlgmr.msra.gmra.mrb[12].mxu0 %v4022_v27  ;;  %v5121_v27 = vld [vmem:[%s6030_s17 + $0x8c0] ss:$8 sps:$4 sm:$0xff]  }
 0x215   : > { %3363 = vmatmul.mubr.bf16.vlgmr.msra.gmra.mrb[12].mxu1 %v4024_v35  ;;  %3372 = vmatpush1.bf16.msra.mxu0 %v5047_v37  ;;  %v5124_v35 = vld [vmem:[%s6030_s17 + $0x9c0] ss:$8 sps:$4 sm:$0xff]   ;;  %v5129_v37 = vld [vmem:[%s6030_s17 + $0x8d4] ss:$8 sps:$4 sm:$0xff]  }
 0x216   : > { %3413 = vmatpush1.bf16.msra.mxu1 %v5052_v38  ;;  %3373 = vmatprep.subr.bf16.mxu0 %v5057_v39  ;;  %v5132_v38 = vld [vmem:[%s6030_s17 + $0x9d4] ss:$8 sps:$4 sm:$0xff]   ;;  %v5127_v39 = vld [vmem:[%s6030_s17 + $0x8d0] ss:$8 sps:$4 sm:$0xff]  }
 0x217   : > { %3414 = vmatprep.subr.bf16.mxu1 %v5060_v40  ;;  %3403 = vmatprep.mubr.bf16.mxu0 %v4027_v31  ;;  %v5130_v40 = vld [vmem:[%s6030_s17 + $0x9d0] ss:$8 sps:$4 sm:$0xff]   ;;  %v5135_v31 = vld [vmem:[%s6030_s17 + $0x8e4] ss:$8 sps:$4 sm:$0xff]  }
 0x218   : > { %3444 = vmatprep.mubr.bf16.mxu1 %v4029_v32  ;;  %v5138_v32 = vld [vmem:[%s6030_s17 + $0x9e4] ss:$8 sps:$4 sm:$0xff]  }
 0x219   : > { %3374 = vmatpush1.bf16.msra.mxu0 %v5055_v41  ;;  %v5133_v41 = vld [vmem:[%s6030_s17 + $0x8e0] ss:$8 sps:$4 sm:$0xff]  }
 0x21a   : > { %3415 = vmatpush1.bf16.msra.mxu1 %v5058_v42  ;;  %3375 = vmatprep.subr.bf16.mxu0 %v5063_v43  ;;  %v5136_v42 = vld [vmem:[%s6030_s17 + $0x9e0] ss:$8 sps:$4 sm:$0xff]   ;;  %v5141_v43 = vld [vmem:[%s6030_s17 + $0x8f4] ss:$8 sps:$4 sm:$0xff]  }
 0x21b   : > { %3416 = vmatprep.subr.bf16.mxu1 %v5066_v44  ;;  %v5144_v44 = vld [vmem:[%s6030_s17 + $0x9f4] ss:$8 sps:$4 sm:$0xff]  }
 0x21d   : > { %3376 = vmatpush1.bf16.msra.mxu0 %v5061_v45  ;;  %v5139_v45 = vld [vmem:[%s6030_s17 + $0x8f0] ss:$8 sps:$4 sm:$0xff]  }
 0x21e   : > { %3417 = vmatpush1.bf16.msra.mxu1 %v5064_v46  ;;  %3377 = vmatprep.subr.bf16.mxu0 %v5069_v47  ;;  %v5142_v46 = vld [vmem:[%s6030_s17 + $0x9f0] ss:$8 sps:$4 sm:$0xff]   ;;  %v5149_v47 = vld [vmem:[%s6030_s17 + $0xa04] ss:$8 sps:$4 sm:$0xff]  }
 0x21f   : > { %3418 = vmatprep.subr.bf16.mxu1 %v5072_v48  ;;  %v5154_v48 = vld [vmem:[%s6030_s17 + $0xb04] ss:$8 sps:$4 sm:$0xff]  }
 0x221   : > { %3378 = vmatpush1.bf16.msra.mxu0 %v5067_v49  ;;  %v4026_v49 = vcombine.low %v6368_v25, %v6368_v25 }
 0x222   : > { %3419 = vmatpush1.bf16.msra.mxu1 %v5070_v50  ;;  %3379 = vmatprep.subr.bf16.mxu0 %v5075_v51  ;;  %v4028_v50 = vcombine.low %v6375_v36, %v6375_v36  ;;  %v6454_v51 = vld [vmem:[%s6113_s14 + $0x50] sm:$0xff] }
 0x223   : > { %3420 = vmatprep.subr.bf16.mxu1 %v5078_v52  ;;  %v6457_v52 = vld [vmem:[%s6113_s14 + $0x58] sm:$0xff]  ;;  %v4031_v25 = vcombine.high %v6454_v51, %v6454_v51 }
 0x224   : > { %v4033_v36 = vcombine.high %v6457_v52, %v6457_v52 }
 0x225   : > { %3380 = vmatpush1.bf16.msra.mxu0 %v5073_v53  ;;  %v5147_v53 = vld [vmem:[%s6030_s17 + $0xa00] ss:$8 sps:$4 sm:$0xff]  }
 0x226   : > { %3421 = vmatpush1.bf16.msra.mxu1 %v5076_v54  ;;  %3381 = vmatprep.subr.bf16.mxu0 %v5081_v55  ;;  %v5152_v54 = vld [vmem:[%s6030_s17 + $0xb00] ss:$8 sps:$4 sm:$0xff]   ;;  %v5157_v55 = vld [vmem:[%s6030_s17 + $0xa14] ss:$8 sps:$4 sm:$0xff]  }
 0x227   : > { %3422 = vmatprep.subr.bf16.mxu1 %v5084_v56  ;;  %v3077_v61 = vpop.f32.mrb[0].mxu0  ;;  %v5160_v56 = vld [vmem:[%s6030_s17 + $0xb14] ss:$8 sps:$4 sm:$0xff]  }
 0x228   : > { %v3118_v62 = vpop.f32.mrb[0].mxu1  ;;  %v3079_v0 = vpop.f32.mrb[1].mxu0 }
 0x229   : > { %v6405_v63 = vadd.f32 %v3118_v62, %v3077_v61  ;;  %v3120_v1 = vpop.f32.mrb[1].mxu1  ;;  %v3081_v3 = vpop.f32.mrb[2].mxu0  ;;  %3382 = vmatpush1.bf16.msra.mxu0 %v5079_v57  ;;  %v5155_v57 = vld [vmem:[%s6030_s17 + $0xa10] ss:$8 sps:$4 sm:$0xff]   ;;  %v5161_v61 = vld [vmem:[%s6030_s17 + $0xa20] ss:$8 sps:$4 sm:$0xff]  }
 0x22a   : > { %v6407_v2 = vadd.f32 %v3120_v1, %v3079_v0  ;;  %3423 = vmatpush1.bf16.msra.mxu1 %v5082_v58  ;;  %v3122_v6 = vpop.f32.mrb[2].mxu1  ;;  %v3082_v7 = vpop.f32.mrb[3].mxu0  ;;  %3383 = vmatprep.subr.bf16.mxu0 %v5087_v59  ;;  %v5158_v58 = vld [vmem:[%s6030_s17 + $0xb10] ss:$8 sps:$4 sm:$0xff]   ;;  %v5163_v59 = vld [vmem:[%s6030_s17 + $0xa24] ss:$8 sps:$4 sm:$0xff]  }
 0x22b   : > { %3424 = vmatprep.subr.bf16.mxu1 %v5090_v60  ;;  %v3123_v10 = vpop.f32.mrb[3].mxu1  ;;  %v5166_v60 = vld [vmem:[%s6030_s17 + $0xb24] ss:$8 sps:$4 sm:$0xff]   ;;  %v5164_v62 = vld [vmem:[%s6030_s17 + $0xb20] ss:$8 sps:$4 sm:$0xff]  }
 0x22c   : > { %v5169_v0 = vld [vmem:[%s6030_s17 + $0xa34] ss:$8 sps:$4 sm:$0xff]   ;;  %v5167_v3 = vld [vmem:[%s6030_s17 + $0xa30] ss:$8 sps:$4 sm:$0xff]   ;;  %v5178_v6 = vld [vmem:[%s6030_s17 + $0xb44] ss:$8 sps:$4 sm:$0xff]  }
 0x22d   : > { %3384 = vmatpush1.bf16.msra.mxu0 %v5085_v4  ;;  %v5172_v1 = vld [vmem:[%s6030_s17 + $0xb34] ss:$8 sps:$4 sm:$0xff]   ;;  %v5170_v4 = vld [vmem:[%s6030_s17 + $0xb30] ss:$8 sps:$4 sm:$0xff]   ;;  %v5173_v7 = vld [vmem:[%s6030_s17 + $0xa40] ss:$8 sps:$4 sm:$0xff]  }
 0x22e   : > { %3425 = vmatpush1.bf16.msra.mxu1 %v5088_v5  ;;  %3385 = vmatprep.subr.bf16.mxu0 %v5093_v8  ;;  %v5175_v5 = vld [vmem:[%s6030_s17 + $0xa44] ss:$8 sps:$4 sm:$0xff]   ;;  %v5176_v8 = vld [vmem:[%s6030_s17 + $0xb40] ss:$8 sps:$4 sm:$0xff]   ;;  %v5184_v10 = vld [vmem:[%s6030_s17 + $0xb54] ss:$8 sps:$4 sm:$0xff]  }
 0x22f   : > { %3426 = vmatprep.subr.bf16.mxu1 %v5096_v9  ;;  %v5181_v9 = vld [vmem:[%s6030_s17 + $0xa54] ss:$8 sps:$4 sm:$0xff]  }
 0x231   : > { %3386 = vmatpush1.bf16.msra.mxu0 %v5091_v11  ;;  %v5179_v11 = vld [vmem:[%s6030_s17 + $0xa50] ss:$8 sps:$4 sm:$0xff]  }
 0x232   : > { %3427 = vmatpush1.bf16.msra.mxu1 %v5094_v12  ;;  %3387 = vmatprep.subr.bf16.mxu0 %v5099_v13  ;;  %v5182_v12 = vld [vmem:[%s6030_s17 + $0xb50] ss:$8 sps:$4 sm:$0xff]   ;;  %v5187_v13 = vld [vmem:[%s6030_s17 + $0xa64] ss:$8 sps:$4 sm:$0xff]  }
 0x233   : > { %3428 = vmatprep.subr.bf16.mxu1 %v5102_v14  ;;  %v5190_v14 = vld [vmem:[%s6030_s17 + $0xb64] ss:$8 sps:$4 sm:$0xff]  }
 0x235   : > { %3388 = vmatpush1.bf16.msra.mxu0 %v5097_v15 }
 0x236   : > { %3429 = vmatpush1.bf16.msra.mxu1 %v5100_v16  ;;  %3389 = vmatprep.subr.bf16.mxu0 %v5105_v17 }
 0x237   : > { %3430 = vmatprep.subr.bf16.mxu1 %v5108_v18 }
 0x239   : > { %3390 = vmatpush1.bf16.msra.mxu0 %v5103_v19 }
 0x23a   : > { %3431 = vmatpush1.bf16.msra.mxu1 %v5106_v20  ;;  %3391 = vmatprep.subr.bf16.mxu0 %v5111_v21 }
 0x23b   : > { %3432 = vmatprep.subr.bf16.mxu1 %v5114_v22  ;;  %v5185_v22 = vld [vmem:[%s6030_s17 + $0xa60] ss:$8 sps:$4 sm:$0xff]  }
 0x23d   : > { %3392 = vmatpush1.bf16.msra.mxu0 %v5109_v23  ;;  %v5188_v23 = vld [vmem:[%s6030_s17 + $0xb60] ss:$8 sps:$4 sm:$0xff]  }
 0x23e   : > { %3433 = vmatpush1.bf16.msra.mxu1 %v5112_v24  ;;  %3393 = vmatprep.subr.bf16.mxu0 %v5117_v26 }
 0x23f   : > { %3434 = vmatprep.subr.bf16.mxu1 %v5120_v28 }
 0x241   : > { %3394 = vmatpush1.bf16.msra.mxu0 %v5115_v29  ;;  %v5196_v29 = vld [vmem:[%s6030_s17 + $0xb74] ss:$8 sps:$4 sm:$0xff]  }
 0x242   : > { %3435 = vmatpush1.bf16.msra.mxu1 %v5118_v30  ;;  %3395 = vmatprep.subr.bf16.mxu0 %v5123_v33  ;;  %v5191_v33 = vld [vmem:[%s6030_s17 + $0xa70] ss:$8 sps:$4 sm:$0xff]  }
 0x243   : > { %3436 = vmatprep.subr.bf16.mxu1 %v5126_v34  ;;  %v5194_v34 = vld [vmem:[%s6030_s17 + $0xb70] ss:$8 sps:$4 sm:$0xff]  }
 0x245   : > { %3396 = vmatpush1.bf16.msra.mxu0 %v5121_v27  ;;  %v5199_v27 = vld [vmem:[%s6030_s17 + $0xa84] ss:$8 sps:$4 sm:$0xff]  }
 0x246   : > { %3437 = vmatpush1.bf16.msra.mxu1 %v5124_v35  ;;  %3397 = vmatprep.subr.bf16.mxu0 %v5129_v37  ;;  %v5202_v35 = vld [vmem:[%s6030_s17 + $0xb84] ss:$8 sps:$4 sm:$0xff]   ;;  %v5197_v37 = vld [vmem:[%s6030_s17 + $0xa80] ss:$8 sps:$4 sm:$0xff]  }
 0x247   : > { %3438 = vmatprep.subr.bf16.mxu1 %v5132_v38  ;;  %v5200_v38 = vld [vmem:[%s6030_s17 + $0xb80] ss:$8 sps:$4 sm:$0xff]  }
 0x249   : > { %3398 = vmatpush1.bf16.msra.mxu0 %v5127_v39  ;;  %v5205_v39 = vld [vmem:[%s6030_s17 + $0xa94] ss:$8 sps:$4 sm:$0xff]  }
 0x24a   : > { %3439 = vmatpush1.bf16.msra.mxu1 %v5130_v40  ;;  %3399 = vmatprep.subr.bf16.mxu0 %v5135_v31  ;;  %v5208_v40 = vld [vmem:[%s6030_s17 + $0xb94] ss:$8 sps:$4 sm:$0xff]   ;;  %v5203_v31 = vld [vmem:[%s6030_s17 + $0xa90] ss:$8 sps:$4 sm:$0xff]  }
 0x24b   : > { %3440 = vmatprep.subr.bf16.mxu1 %v5138_v32  ;;  %v5206_v32 = vld [vmem:[%s6030_s17 + $0xb90] ss:$8 sps:$4 sm:$0xff]  }
 0x24d   : > { %3400 = vmatpush1.bf16.msra.mxu0 %v5133_v41  ;;  %v5211_v41 = vld [vmem:[%s6030_s17 + $0xaa4] ss:$8 sps:$4 sm:$0xff]  }
 0x24e   : > { %3441 = vmatpush1.bf16.msra.mxu1 %v5136_v42  ;;  %3401 = vmatprep.subr.bf16.mxu0 %v5141_v43  ;;  %v5214_v42 = vld [vmem:[%s6030_s17 + $0xba4] ss:$8 sps:$4 sm:$0xff]   ;;  %v5209_v43 = vld [vmem:[%s6030_s17 + $0xaa0] ss:$8 sps:$4 sm:$0xff]  }
 0x24f   : > { %3442 = vmatprep.subr.bf16.mxu1 %v5144_v44  ;;  %v5212_v44 = vld [vmem:[%s6030_s17 + $0xba0] ss:$8 sps:$4 sm:$0xff]  }
 0x251   : > { %3402 = vmatpush1.bf16.msra.mxu0 %v5139_v45  ;;  %v5217_v45 = vld [vmem:[%s6030_s17 + $0xab4] ss:$8 sps:$4 sm:$0xff]  }
 0x252   : > { %3443 = vmatpush1.bf16.msra.mxu1 %v5142_v46  ;;  %3453 = vmatprep.subr.bf16.mxu0 %v5149_v47  ;;  %v5220_v46 = vld [vmem:[%s6030_s17 + $0xbb4] ss:$8 sps:$4 sm:$0xff]   ;;  %v5215_v47 = vld [vmem:[%s6030_s17 + $0xab0] ss:$8 sps:$4 sm:$0xff]  }
 0x253   : > { %3494 = vmatprep.subr.bf16.mxu1 %v5154_v48  ;;  %v5218_v48 = vld [vmem:[%s6030_s17 + $0xbb0] ss:$8 sps:$4 sm:$0xff]  }
 0x254   : > { %3404 = vmatmul.mubr.bf16.vlgmr.msra.gmra.mrb[16].mxu0 %v4026_v49  ;;  %v5223_v49 = vld [vmem:[%s6030_s17 + $0xac4] ss:$8 sps:$4 sm:$0xff]  }
 0x255   : > { %3445 = vmatmul.mubr.bf16.vlgmr.msra.gmra.mrb[16].mxu1 %v4028_v50  ;;  %3454 = vmatpush1.bf16.msra.mxu0 %v5147_v53  ;;  %v5226_v50 = vld [vmem:[%s6030_s17 + $0xbc4] ss:$8 sps:$4 sm:$0xff]   ;;  %v5221_v53 = vld [vmem:[%s6030_s17 + $0xac0] ss:$8 sps:$4 sm:$0xff]  }
 0x256   : > { %3495 = vmatpush1.bf16.msra.mxu1 %v5152_v54  ;;  %3455 = vmatprep.subr.bf16.mxu0 %v5157_v55  ;;  %v5224_v54 = vld [vmem:[%s6030_s17 + $0xbc0] ss:$8 sps:$4 sm:$0xff]   ;;  %v5229_v55 = vld [vmem:[%s6030_s17 + $0xad4] ss:$8 sps:$4 sm:$0xff]  }
 0x257   : > { %3496 = vmatprep.subr.bf16.mxu1 %v5160_v56  ;;  %3485 = vmatprep.mubr.bf16.mxu0 %v4031_v25  ;;  %v5232_v56 = vld [vmem:[%s6030_s17 + $0xbd4] ss:$8 sps:$4 sm:$0xff]   ;;  %v5227_v25 = vld [vmem:[%s6030_s17 + $0xad0] ss:$8 sps:$4 sm:$0xff]  }
 0x258   : > { %3526 = vmatprep.mubr.bf16.mxu1 %v4033_v36  ;;  %v5230_v36 = vld [vmem:[%s6030_s17 + $0xbd0] ss:$8 sps:$4 sm:$0xff]  }
 0x259   : > { %3456 = vmatpush1.bf16.msra.mxu0 %v5155_v57  ;;  %v5235_v57 = vld [vmem:[%s6030_s17 + $0xae4] ss:$8 sps:$4 sm:$0xff]  }
 0x25a   : > { %3497 = vmatpush1.bf16.msra.mxu1 %v5158_v58  ;;  %3457 = vmatprep.subr.bf16.mxu0 %v5163_v59  ;;  %v5238_v58 = vld [vmem:[%s6030_s17 + $0xbe4] ss:$8 sps:$4 sm:$0xff]   ;;  %v5233_v59 = vld [vmem:[%s6030_s17 + $0xae0] ss:$8 sps:$4 sm:$0xff]  }
 0x25b   : > { %3498 = vmatprep.subr.bf16.mxu1 %v5166_v60  ;;  %v5236_v60 = vld [vmem:[%s6030_s17 + $0xbe0] ss:$8 sps:$4 sm:$0xff]  }
 0x25d   : > { %3458 = vmatpush1.bf16.msra.mxu0 %v5161_v61  ;;  %v5241_v61 = vld [vmem:[%s6030_s17 + $0xaf4] ss:$8 sps:$4 sm:$0xff]  }
 0x25e   : > { %3499 = vmatpush1.bf16.msra.mxu1 %v5164_v62  ;;  %3459 = vmatprep.subr.bf16.mxu0 %v5169_v0  ;;  %v5244_v62 = vld [vmem:[%s6030_s17 + $0xbf4] ss:$8 sps:$4 sm:$0xff]   ;;  %v5239_v0 = vld [vmem:[%s6030_s17 + $0xaf0] ss:$8 sps:$4 sm:$0xff]  }
 0x25f   : > { %3500 = vmatprep.subr.bf16.mxu1 %v5172_v1  ;;  %v5242_v1 = vld [vmem:[%s6030_s17 + $0xbf0] ss:$8 sps:$4 sm:$0xff]  }
 0x261   : > { %3460 = vmatpush1.bf16.msra.mxu0 %v5167_v3  ;;  %v5249_v3 = vld [vmem:[%s6030_s17 + $0xc04] ss:$8 sps:$4 sm:$0xff]  }
 0x262   : > { %3501 = vmatpush1.bf16.msra.mxu1 %v5170_v4  ;;  %3461 = vmatprep.subr.bf16.mxu0 %v5175_v5  ;;  %v4030_v4 = vcombine.low %v6454_v51, %v6454_v51  ;;  %v4032_v5 = vcombine.low %v6457_v52, %v6457_v52  ;;  %v5257_v51 = vld [vmem:[%s6030_s17 + $0xc24] ss:$8 sps:$4 sm:$0xff]   ;;  %v5255_v52 = vld [vmem:[%s6030_s17 + $0xc20] ss:$8 sps:$4 sm:$0xff]  }
 0x263   : > { %3502 = vmatprep.subr.bf16.mxu1 %v5178_v6  ;;  %v5247_v6 = vld [vmem:[%s6030_s17 + $0xc00] ss:$8 sps:$4 sm:$0xff]  }
 0x265   : > { %3462 = vmatpush1.bf16.msra.mxu0 %v5173_v7  ;;  %v5254_v7 = vld [vmem:[%s6030_s17 + $0xc14] ss:$8 sps:$4 sm:$0xff]  }
 0x266   : > { %3503 = vmatpush1.bf16.msra.mxu1 %v5176_v8  ;;  %3463 = vmatprep.subr.bf16.mxu0 %v5181_v9  ;;  %v5252_v8 = vld [vmem:[%s6030_s17 + $0xc10] ss:$8 sps:$4 sm:$0xff]   ;;  %v5603_v9 = vmov 0  }
 0x267   : > { %3504 = vmatprep.subr.bf16.mxu1 %v5184_v10  ;;  %v3159_v15 = vpop.f32.mrb[4].mxu0  ;;  %v5260_v10 = vld [vmem:[%s6030_s17 + $0xc34] ss:$8 sps:$4 sm:$0xff]  }
 0x268   : > { %v3200_v16 = vpop.f32.mrb[4].mxu1  ;;  %v3160_v17 = vadd.f32 %v3159_v15, %v6405_v63  ;;  %v3161_v18 = vpop.f32.mrb[5].mxu0  ;;  %v5193_v63 = vld [vmem:[%s6030_s17 + $0xa74] ss:$8 sps:$4 sm:$0xff]   ;;  %v5264_v15 = vld [vmem:[%s6030_s17 + $0xc50] ss:$8 sps:$4 sm:$0xff]  }
 0x269   : > { %v3202_v19 = vpop.f32.mrb[5].mxu1  ;;  %v3162_v20 = vadd.f32 %v3161_v18, %v6407_v2  ;;  %v3163_v21 = vpop.f32.mrb[6].mxu0  ;;  %3464 = vmatpush1.bf16.msra.mxu0 %v5179_v11  ;;  %v5258_v11 = vld [vmem:[%s6030_s17 + $0xc30] ss:$8 sps:$4 sm:$0xff]  }
 0x26a   : > { %3505 = vmatpush1.bf16.msra.mxu1 %v5182_v12  ;;  %v3204_v24 = vpop.f32.mrb[6].mxu1  ;;  %v6491_v26 = vadd.f32 %v3200_v16, %v3160_v17  ;;  %v3164_v28 = vpop.f32.mrb[7].mxu0  ;;  %3465 = vmatprep.subr.bf16.mxu0 %v5187_v13  ;;  %v5263_v12 = vld [vmem:[%s6030_s17 + $0xc44] ss:$8 sps:$4 sm:$0xff]   ;;  %v5261_v13 = vld [vmem:[%s6030_s17 + $0xc40] ss:$8 sps:$4 sm:$0xff]  }
 0x26b   : > { %3506 = vmatprep.subr.bf16.mxu1 %v5190_v14  ;;  %v3205_v2 = vpop.f32.mrb[7].mxu1  ;;  %v6495_v30 = vadd.f32 %v3202_v19, %v3162_v20  ;;  %v5266_v14 = vld [vmem:[%s6030_s17 + $0xc54] ss:$8 sps:$4 sm:$0xff]   ;;  %v5269_v16 = vld [vmem:[%s6030_s17 + $0xc64] ss:$8 sps:$4 sm:$0xff]  }
 0x26c   : > { %v5267_v24 = vld [vmem:[%s6030_s17 + $0xc60] ss:$8 sps:$4 sm:$0xff]   ;;  %v5272_v2 = vld [vmem:[%s6030_s17 + $0xc74] ss:$8 sps:$4 sm:$0xff]  }
 0x26d   : > { %3466 = vmatpush1.bf16.msra.mxu0 %v5185_v22 }
 0x26e   : > { %3507 = vmatpush1.bf16.msra.mxu1 %v5188_v23  ;;  %3467 = vmatprep.subr.bf16.mxu0 %v5193_v63 }
 0x26f   : > { %3508 = vmatprep.subr.bf16.mxu1 %v5196_v29 }
 0x271   : > { %3468 = vmatpush1.bf16.msra.mxu0 %v5191_v33 }
 0x272   : > { %3509 = vmatpush1.bf16.msra.mxu1 %v5194_v34  ;;  %3469 = vmatprep.subr.bf16.mxu0 %v5199_v27  ;;  %v5270_v27 = vld [vmem:[%s6030_s17 + $0xc70] ss:$8 sps:$4 sm:$0xff]  }
 0x273   : > { %3510 = vmatprep.subr.bf16.mxu1 %v5202_v35  ;;  %v5273_v35 = vld [vmem:[%s6113_s14 + $0x60] ss:$0 sps:$4 sm:$0xff]  }
 0x275   : > { %3470 = vmatpush1.bf16.msra.mxu0 %v5197_v37 }
 0x276   : > { %3511 = vmatpush1.bf16.msra.mxu1 %v5200_v38  ;;  %3471 = vmatprep.subr.bf16.mxu0 %v5205_v39 }
 0x277   : > { %3512 = vmatprep.subr.bf16.mxu1 %v5208_v40 }
 0x279   : > { %3472 = vmatpush1.bf16.msra.mxu0 %v5203_v31 }
 0x27a   : > { %3513 = vmatpush1.bf16.msra.mxu1 %v5206_v32  ;;  %3473 = vmatprep.subr.bf16.mxu0 %v5211_v41 }
 0x27b   : > { %3514 = vmatprep.subr.bf16.mxu1 %v5214_v42 }
 0x27d   : > { %3474 = vmatpush1.bf16.msra.mxu0 %v5209_v43 }
 0x27e   : > { %3515 = vmatpush1.bf16.msra.mxu1 %v5212_v44  ;;  %3475 = vmatprep.subr.bf16.mxu0 %v5217_v45 }
 0x27f   : > { %3516 = vmatprep.subr.bf16.mxu1 %v5220_v46 }
 0x281   : > { %3476 = vmatpush1.bf16.msra.mxu0 %v5215_v47 }
 0x282   : > { %3517 = vmatpush1.bf16.msra.mxu1 %v5218_v48  ;;  %3477 = vmatprep.subr.bf16.mxu0 %v5223_v49 }
 0x283   : > { %3518 = vmatprep.subr.bf16.mxu1 %v5226_v50 }
 0x285   : > { %3478 = vmatpush1.bf16.msra.mxu0 %v5221_v53 }
 0x286   : > { %3519 = vmatpush1.bf16.msra.mxu1 %v5224_v54  ;;  %3479 = vmatprep.subr.bf16.mxu0 %v5229_v55 }
 0x287   : > { %3520 = vmatprep.subr.bf16.mxu1 %v5232_v56 }
 0x289   : > { %3480 = vmatpush1.bf16.msra.mxu0 %v5227_v25 }
 0x28a   : > { %3521 = vmatpush1.bf16.msra.mxu1 %v5230_v36  ;;  %3481 = vmatprep.subr.bf16.mxu0 %v5235_v57 }
 0x28b   : > { %3522 = vmatprep.subr.bf16.mxu1 %v5238_v58 }
 0x28d   : > { %3482 = vmatpush1.bf16.msra.mxu0 %v5233_v59 }
 0x28e   : > { %3523 = vmatpush1.bf16.msra.mxu1 %v5236_v60  ;;  %3483 = vmatprep.subr.bf16.mxu0 %v5241_v61 }
 0x28f   : > { %3524 = vmatprep.subr.bf16.mxu1 %v5244_v62 }
 0x291   : > { %3484 = vmatpush1.bf16.msra.mxu0 %v5239_v0 }
 0x292   : > { %3525 = vmatpush1.bf16.msra.mxu1 %v5242_v1  ;;  %3535 = vmatprep.subr.bf16.mxu0 %v5249_v3 }
 0x294   : > { %3486 = vmatmul.mubr.bf16.vlgmr.msra.gmra.mrb[20].mxu0 %v4030_v4 }
 0x295   : > { %3527 = vmatmul.mubr.bf16.vlgmr.msra.gmra.mrb[20].mxu1 %v4032_v5  ;;  %3536 = vmatpush1.bf16.msra.mxu0 %v5247_v6 }
 0x296   : > { %3567 = vmatprep.mubr.bf16.mxu0 %v5603_v9  ;;  %3537 = vmatprep.subr.bf16.mxu0 %v5254_v7  ;;  %v553_v7 = vld [vmem:[#allocation2] sm:$0xff] }
 0x299   : > { %3538 = vmatpush1.bf16.msra.mxu0 %v5252_v8 }
 0x29a   : > { %3539 = vmatprep.subr.bf16.mxu0 %v5257_v51  ;;  %v554_v51 = vld [vmem:[#allocation2 + $0x8] sm:$0xff] }
 0x29d   : > { %3540 = vmatpush1.bf16.msra.mxu0 %v5255_v52 }
 0x29e   : > { %3541 = vmatprep.subr.bf16.mxu0 %v5260_v10 }
 0x2a1   : > { %3542 = vmatpush1.bf16.msra.mxu0 %v5258_v11 }
 0x2a2   : > { %3543 = vmatprep.subr.bf16.mxu0 %v5263_v12 }
 0x2a5   : > { %3544 = vmatpush1.bf16.msra.mxu0 %v5261_v13 }
 0x2a6   : > { %3545 = vmatprep.subr.bf16.mxu0 %v5266_v14 }
 0x2a7   : > { %v3241_v17 = vpop.f32.mrb[8].mxu0 }
 0x2a8   : > { %v3282_v18 = vpop.f32.mrb[8].mxu1  ;;  %v3242_v19 = vadd.f32 %v3241_v17, %v6491_v26  ;;  %v3243_v20 = vpop.f32.mrb[9].mxu0  ;;  %v3676_v17 = vld [vmem:[%s6050_s7] sm:$0xff] (!%p4435_p10) }
 0x2a9   : > { %v3284_v21 = vpop.f32.mrb[9].mxu1  ;;  %v3244_v22 = vadd.f32 %v3243_v20, %v6495_v30  ;;  %v3245_v23 = vpop.f32.mrb[10].mxu0  ;;  %3546 = vmatpush1.bf16.msra.mxu0 %v5264_v15  ;;  %v3692_v15 = vld [vmem:[%s6050_s7 + $0x80] sm:$0xff] (!%p4435_p10)  ;;  %v3694_v20 = vld [vmem:[%s6050_s7 + $0x90] sm:$0xff] (!%p4435_p10) }
 0x2aa   : > { %v3286_v28 = vpop.f32.mrb[10].mxu1  ;;  %v3283_v63 = vadd.f32 %v3282_v18, %v3242_v19  ;;  %v3246_v29 = vpop.f32.mrb[11].mxu0  ;;  %3547 = vmatprep.subr.bf16.mxu0 %v5269_v16  ;;  %v3693_v16 = vld [vmem:[%s6050_s7 + $0x88] sm:$0xff] (!%p4435_p10) }
 0x2ab   : > { %v3287_v33 = vpop.f32.mrb[11].mxu1  ;;  %v3285_v34 = vadd.f32 %v3284_v21, %v3244_v22  ;;  %v4479_v18 = vpack.c.bf16 (!%p4435_p10), %v3693_v16, %v3692_v15  ;;  %v3677_v19 = vld [vmem:[%s6050_s7 + $0x8] sm:$0xff] (!%p4435_p10)  ;;  %v3695_v21 = vld [vmem:[%s6050_s7 + $0x98] sm:$0xff] (!%p4435_p10) }
 0x2ac   : > { %v4481_v22 = vpack.c.bf16 (!%p4435_p10), %v3677_v19, %v3676_v17  ;;  %v4483_v23 = vpack.c.bf16 (!%p4435_p10), %v3695_v21, %v3694_v20  ;;  %v3679_v28 = vld [vmem:[%s6050_s7 + $0x18] sm:$0xff] (!%p4435_p10)  ;;  %v3697_v29 = vld [vmem:[%s6050_s7 + $0xa8] sm:$0xff] (!%p4435_p10) }
 0x2ad   : > { %3548 = vmatpush1.bf16.msra.mxu0 %v5267_v24  ;;  %v3678_v24 = vld [vmem:[%s6050_s7 + $0x10] sm:$0xff] (!%p4435_p10) }
 0x2ae   : > { %3549 = vmatprep.subr.bf16.mxu0 %v5272_v2  ;;  %v4485_v2 = vpack.c.bf16 (!%p4435_p10), %v3679_v28, %v3678_v24 }
 0x2b1   : > { %3550 = vmatpush1.bf16.msra.mxu0 %v5270_v27  ;;  %v3681_v27 = vld [vmem:[%s6050_s7 + $0x28] sm:$0xff] (!%p4435_p10) }
 0x2b2   : > { %4480 = vmatprep.subr.bf16.mxu0 (!%p4435_p10), %v4479_v18 }
 0x2b4   : > { %3568 = vmatmul.mubr.bf16.vlgmr.msra.gmra.mrb[24].mxu0 %v5273_v35  ;;  %v3698_v35 = vld [vmem:[%s6050_s7 + $0xb0] sm:$0xff] (!%p4435_p10) }
 0x2b5   : > { %4482 = vmatpush3.bf16.msra.mxu0 (!%p4435_p10), %v4481_v22 }
 0x2b6   : > { %4484 = vmatprep.subr.bf16.mxu0 (!%p4435_p10), %v4483_v23 }
 0x2b9   : > { %4486 = vmatpush3.bf16.msra.mxu0 (!%p4435_p10), %v4485_v2 }
 0x2e7   : > { %v3323_v26 = vpop.f32.mrb[12].mxu0 }
 0x2e8   : > { %v3364_v37 = vpop.f32.mrb[12].mxu1  ;;  %v3324_v38 = vadd.f32 %v3323_v26, %v3283_v63  ;;  %v3325_v30 = vpop.f32.mrb[13].mxu0  ;;  %v3696_v63 = vld [vmem:[%s6050_s7 + $0xa0] sm:$0xff] (!%p4435_p10)  ;;  %v3699_v26 = vld [vmem:[%s6050_s7 + $0xb8] sm:$0xff] (!%p4435_p10) }
 0x2e9   : > { %v3366_v39 = vpop.f32.mrb[13].mxu1  ;;  %v3326_v40 = vadd.f32 %v3325_v30, %v3285_v34  ;;  %v3327_v31 = vpop.f32.mrb[14].mxu0  ;;  %v4487_v33 = vpack.c.bf16 (!%p4435_p10), %v3697_v29, %v3696_v63  ;;  %v3680_v34 = vld [vmem:[%s6050_s7 + $0x20] sm:$0xff] (!%p4435_p10)  ;;  %v3682_v30 = vld [vmem:[%s6050_s7 + $0x30] sm:$0xff] (!%p4435_p10) }
 0x2ea   : > { %v3368_v32 = vpop.f32.mrb[14].mxu1  ;;  %v3365_v41 = vadd.f32 %v3364_v37, %v3324_v38  ;;  %v3328_v42 = vpop.f32.mrb[15].mxu0  ;;  %v4489_v37 = vpack.c.bf16 (!%p4435_p10), %v3681_v27, %v3680_v34  ;;  %v4491_v38 = vpack.c.bf16 (!%p4435_p10), %v3699_v26, %v3698_v35  ;;  %v3701_v31 = vld [vmem:[%s6050_s7 + $0xc8] sm:$0xff] (!%p4435_p10) }
 0x2eb   : > { %v3369_v43 = vpop.f32.mrb[15].mxu1  ;;  %v3367_v44 = vadd.f32 %v3366_v39, %v3326_v40  ;;  %4488 = vmatprep.subr.bf16.mxu0 (!%p4435_p10), %v4487_v33  ;;  %v3683_v39 = vld [vmem:[%s6050_s7 + $0x38] sm:$0xff] (!%p4435_p10)  ;;  %v3700_v40 = vld [vmem:[%s6050_s7 + $0xc0] sm:$0xff] (!%p4435_p10) }
 0x2ec   : > { %4490 = vmatpush3.bf16.msra.mxu0 (!%p4435_p10), %v4489_v37  ;;  %v4493_v43 = vpack.c.bf16 (!%p4435_p10), %v3683_v39, %v3682_v30  ;;  %v3630_v39 = vlaneseq (!%p4435_p10) }
 0x2ed   : > { %4492 = vmatprep.subr.bf16.mxu0 (!%p4435_p10), %v4491_v38  ;;  %v5604_v38 = vmov (!%p4435_p10), 1966171168  }
 0x2ee   : > { %v3628_v30 = vunpack.c.l.s4 (!%p4435_p10), %v5604_v38 }
 0x2f0   : > { %4494 = vmatpush3.bf16.msra.mxu0 (!%p4435_p10), %v4493_v43 }
 0x327   : > { %v3405_v45 = vpop.f32.mrb[16].mxu0 }
 0x328   : > { %v3446_v46 = vpop.f32.mrb[16].mxu1  ;;  %v3406_v47 = vadd.f32 %v3405_v45, %v3365_v41  ;;  %v3407_v48 = vpop.f32.mrb[17].mxu0  ;;  %v4495_v45 = vpack.c.bf16 (!%p4435_p10), %v3701_v31, %v3700_v40  ;;  %v3629_v40 = vunpack.c.0.s8 (!%p4435_p10), %v3628_v30  ;;  %v3631_v31 = vshrl.u32 (!%p4435_p10), %v3630_v39, 7 }
 0x329   : > { %v3448_v49 = vpop.f32.mrb[17].mxu1  ;;  %v3408_v50 = vadd.f32 %v3407_v48, %v3367_v44  ;;  %v3409_v53 = vpop.f32.mrb[18].mxu0 }
 0x32a   : > { %v3450_v54 = vpop.f32.mrb[18].mxu1  ;;  %v3447_v55 = vadd.f32 %v3446_v46, %v3406_v47  ;;  %v3410_v56 = vpop.f32.mrb[19].mxu0  ;;  %v3684_v46 = vld [vmem:[%s6050_s7 + $0x40] sm:$0xff] (!%p4435_p10)  ;;  %v3685_v47 = vld [vmem:[%s6050_s7 + $0x48] sm:$0xff] (!%p4435_p10)  ;;  %4496 = vmatprep.subr.bf16.mxu0 (!%p4435_p10), %v4495_v45  ;;  %v3619_v45 = vld [vmem:[%s424_s13] sm:$0x3] (!%p4435_p10) }
 0x32b   : > { %v3451_v25 = vpop.f32.mrb[19].mxu1  ;;  %v3449_v36 = vadd.f32 %v3448_v49, %v3408_v50  ;;  %v3702_v49 = vld [vmem:[%s6050_s7 + $0xd0] sm:$0xff] (!%p4435_p10)  ;;  %v3703_v50 = vld [vmem:[%s6050_s7 + $0xd8] sm:$0xff] (!%p4435_p10) }
 0x32c   : > { %v4499_v25 = vpack.c.bf16 (!%p4435_p10), %v3703_v50, %v3702_v49  ;;  %v3656_v49 = vld [vmem:[%s433_s3] sm:$0x3] (!%p4435_p10) }
 0x367   : > { %v3487_v57 = vpop.f32.mrb[20].mxu0 }
 0x368   : > { %v3528_v58 = vpop.f32.mrb[20].mxu1  ;;  %v3488_v59 = vadd.f32 %v3487_v57, %v3447_v55  ;;  %v3489_v60 = vpop.f32.mrb[21].mxu0  ;;  %v4497_v55 = vpack.c.bf16 (!%p4435_p10), %v3685_v47, %v3684_v46  ;;  %v3687_v57 = vld [vmem:[%s6050_s7 + $0x58] sm:$0xff] (!%p4435_p10)  ;;  %v3646_v47 = vsub.s32 (!%p4435_p10), 0, %v3631_v31 }
 0x369   : > { %v3530_v61 = vpop.f32.mrb[21].mxu1  ;;  %v3490_v62 = vadd.f32 %v3489_v60, %v3449_v36  ;;  %v3491_v0 = vpop.f32.mrb[22].mxu0  ;;  %v3686_v36 = vld [vmem:[%s6050_s7 + $0x50] sm:$0xff] (!%p4435_p10)  ;;  %v3705_v60 = vld [vmem:[%s6050_s7 + $0xe8] sm:$0xff] (!%p4435_p10) }
 0x36a   : > { %v3532_v1 = vpop.f32.mrb[22].mxu1  ;;  %v3529_v3 = vadd.f32 %v3528_v58, %v3488_v59  ;;  %v3492_v4 = vpop.f32.mrb[23].mxu0  ;;  %v3704_v59 = vld [vmem:[%s6050_s7 + $0xe0] sm:$0xff] (!%p4435_p10)  ;;  %4498 = vmatpush3.bf16.msra.mxu0 (!%p4435_p10), %v4497_v55  ;;  %v4501_v0 = vpack.c.bf16 (!%p4435_p10), %v3687_v57, %v3686_v36 }
 0x36b   : > { %v3533_v5 = vpop.f32.mrb[23].mxu1  ;;  %v3531_v6 = vadd.f32 %v3530_v61, %v3490_v62  ;;  %4500 = vmatprep.subr.bf16.mxu0 (!%p4435_p10), %v4499_v25  ;;  %v3688_v4 = vld [vmem:[%s6050_s7 + $0x60] sm:$0xff] (!%p4435_p10) }
 0x36c   : > { %v3689_v5 = vld [vmem:[%s6050_s7 + $0x68] sm:$0xff] (!%p4435_p10) }
 0x36e   : > { %4502 = vmatpush3.bf16.msra.mxu0 (!%p4435_p10), %v4501_v0 }
 0x387   : > { %v3569_v8 = vpop.f32.mrb[24].mxu0  ;;  %3583 = sbr.rel (%p4435_p10) target bundleno = 1197 (0x4ad), region = 84 }
 0x388   : > { %v3570_v9 = vadd.f32 %v3569_v8, %v3529_v3  ;;  %v3571_v52 = vpop.f32.mrb[25].mxu0  ;;  %v4503_v3 = vpack.c.bf16 (!%p4435_p10), %v3705_v60, %v3704_v59  ;;  %v3707_v8 = vld [vmem:[%s6050_s7 + $0xf8] sm:$0xff] (!%p4435_p10)  ;;  %v3672_v60 = vld [vmem:[%s6063_s23] sm:$0xff] (!%p4435_p10) }
 0x389   : > { %v3572_v10 = vadd.f32 %v3571_v52, %v3531_v6  ;;  %v3573_v11 = vpop.f32.mrb[26].mxu0  ;;  %v4505_v52 = vpack.c.bf16 (!%p4435_p10), %v3689_v5, %v3688_v4  ;;  %v3673_v59 = vld [vmem:[%s6063_s23 + $0x8] sm:$0xff] (!%p4435_p10) }
 0x38a   : > { %v3576_v12 = vadd.f32 %v3570_v9, %v553_v7  ;;  %v3574_v13 = vpop.f32.mrb[27].mxu0  ;;  %v3706_v7 = vld [vmem:[%s6050_s7 + $0xf0] sm:$0xff] (!%p4435_p10)  ;;  %4504 = vmatprep.subr.bf16.mxu0 (!%p4435_p10), %v4503_v3 }
 0x38b   : > { %v3577_v14 = vadd.f32 %v3572_v10, %v554_v51  ;;  %v4507_v11 = vpack.c.bf16 (!%p4435_p10), %v3707_v8, %v3706_v7  ;;  %v3691_v13 = vld [vmem:[%s6050_s7 + $0x78] sm:$0xff] (!%p4435_p10)  ;;  %4506 = vmatpush3.bf16.msra.mxu0 (!%p4435_p10), %v4505_v52 }
 0x38c   : > { %3578 = vst [vmem:[#allocation2] sm:$0xff] %v3576_v12  ;;  %v3690_v12 = vld [vmem:[%s6050_s7 + $0x70] sm:$0xff] (!%p4435_p10) }
 0x38d   : > { %3579 = vst [vmem:[#allocation2 + $0x8] sm:$0xff] %v3577_v14  ;;  %v4509_v17 = vpack.c.bf16 (!%p4435_p10), %v3691_v13, %v3690_v12  ;;  %4508 = vmatprep.subr.bf16.mxu0 (!%p4435_p10), %v4507_v11 }
 0x38f   : > { %4510 = vmatpush3.bf16.msra.mxu0 %v4509_v17 }
 0x393   : > { %v3584_v32 = vld [vmem:[#allocation2] sm:$0xff] }
 0x394   : > { %v3585_v41 = vld [vmem:[#allocation2 + $0x8] sm:$0xff]  ;;  %v3586_v42 = vrot.slane %v3584_v32, 4 }
 0x395   : > { %v3592_v44 = vrot.slane %v3585_v41, 4 }
 0x396   : > { %v3587_v48 = vadd.f32 %v3586_v42, %v3584_v32 }
 0x397   : > { %v3593_v53 = vadd.f32 %v3592_v44, %v3585_v41 }
 0x398   : > { %v3588_v54 = vrot.slane %v3587_v48, 2 }
 0x399   : > { %v3594_v56 = vrot.slane %v3593_v53, 2 }
 0x39a   : > { %v3589_v58 = vadd.f32 %v3588_v54, %v3587_v48  ;;  %v3650_v48 = vsub.s32 1, %v3631_v31  ;;  %v3661_v54 = vrot.slane %v3656_v49, %v3646_v47 }
 0x39b   : > { %v3595_v61 = vadd.f32 %v3594_v56, %v3593_v53 }
 0x39c   : > { %v3590_v62 = vrot.slane %v3589_v58, 1  ;;  %v3665_v55 = vrot.slane %v3656_v49, %v3650_v48 }
 0x39d   : > { %v3596_v1 = vrot.slane %v3595_v61, 1 }
 0x39e   : > { %v3591_v6 = vadd.f32 %v3590_v62, %v3589_v58 }
 0x39f   : > { %v3597_v9 = vadd.f32 %v3596_v1, %v3595_v61 }
 0x3a0   : > { %v3599_v51 = vmul.f32 0.125, %v3591_v6 }
 0x3a1   : > { %v3600_v10 = vmul.f32 0.125, %v3597_v9 }
 0x3a2   : > { %v3601_v14 = vsub.f32 %v3584_v32, %v3599_v51 }
 0x3a3   : > { %v3602_v15 = vsub.f32 %v3585_v41, %v3600_v10  ;;  %v3632_v41 = vsub.s32 %v3629_v40, %v3631_v31 }
 0x3a4   : > { %v3603_v16 = vmul.f32 %v3601_v14, %v3601_v14 }
 0x3a5   : > { %v3604_v18 = vmul.f32 %v3602_v15, %v3602_v15 }
 0x3a6   : > { %v3605_v19 = vrot.slane %v3603_v16, 4 }
 0x3a7   : > { %v3611_v20 = vrot.slane %v3604_v18, 4 }
 0x3a8   : > { %v3606_v21 = vadd.f32 %v3605_v19, %v3603_v16 }
 0x3a9   : > { %v3612_v22 = vadd.f32 %v3611_v20, %v3604_v18 }
 0x3aa   : > { %v3607_v23 = vrot.slane %v3606_v21, 2 }
 0x3ab   : > { %v3613_v24 = vrot.slane %v3612_v22, 2 }
 0x3ac   : > { %v3608_v28 = vadd.f32 %v3607_v23, %v3606_v21 }
 0x3ad   : > { %v3614_v63 = vadd.f32 %v3613_v24, %v3612_v22 }
 0x3ae   : > { %v3609_v29 = vrot.slane %v3608_v28, 1 }
 0x3af   : > { %v3615_v2 = vrot.slane %v3614_v63, 1 }
 0x3b0   : > { %v3610_v33 = vadd.f32 %v3609_v29, %v3608_v28 }
 0x3b1   : > { %v3616_v34 = vadd.f32 %v3615_v2, %v3614_v63 }
 0x3b2   : > { %v3617_v27 = vmul.f32 0.125, %v3610_v33 }
 0x3b3   : > { %v3618_v35 = vmul.f32 0.125, %v3616_v34 }
 0x3b4   : > { %v3620_v26 = vadd.f32 1e-05, %v3617_v27 }
 0x3b5   : > { %v3621_v37 = vadd.f32 1e-05, %v3618_v35 }
 0x3b6   : > { %5274 = vrsqrt.f32 %v3620_v26 }
 0x3b7   : > { %5276 = vrsqrt.f32 %v3621_v37 }
 0x3c0   : > { %v5275_v32 = vpop.eup %5274 }
 0x3c1   : > { %v5277_v42 = vpop.eup %5276 }
 0x3c2   : > { %v3626_v43 = vcombine.low %v5275_v32, %v5277_v42 }
 0x3c4   : > { %v3633_v44 = vrot.slane %v3626_v43, %v3632_v41 }
 0x3c6   : > { %v3640_v46 = vrot.slane %v3633_v44, %v3632_v41 }
 0x3c8   : > { %v3642_v50 = vmul.f32 %v3640_v46, %v3619_v45 }
 0x3ca   : > { %v3651_v53 = vrot.slane %v3642_v50, %v3650_v48  ;;  %v3647_v56 = vrot.slane %v3642_v50, %v3646_v47 }
 0x3cc   : > { %v3655_v25 = vmul.f32 %v3651_v53, %v3602_v15  ;;  %v3654_v36 = vmul.f32 %v3647_v56, %v3601_v14 }
 0x3ce   : > { %v3669_v57 = vadd.f32 %v3665_v55, %v3655_v25  ;;  %v3668_v58 = vadd.f32 %v3661_v54, %v3654_v36 }
 0x3d0   : > { %v3671_v61 = vmax.f32 %v3669_v57, 0.0  ;;  %v3670_v62 = vmax.f32 %v3668_v58, 0.0 }
 0x3d2   : > { %v3675_v0 = vmul.f32 %v3673_v59, %v3671_v61  ;;  %v3674_v1 = vmul.f32 %v3672_v60, %v3670_v62 }
 0x3d4   : > { %3772 = vmatprep.mubr.f32.mxu0 %v3675_v0 }
 0x3d5   : > { %3773 = vmatmul.mubr.f32.vlgmr.msra.gmra.mrb[0].mxu0 %v3674_v1 }
 0x4a8   : > { %v4476_v3 = vpop.f32.mrb[0].mxu0 }
 0x4a9   : > { %v4477_v4 = vpop.f32.mrb[1].mxu0 }
 0x4aa   : > { %v4478_v5 = vadd.f32 %v4477_v4, %v4476_v3 }
 0x4ac   : > { %3778 = vst [vmem:[%s6061_s9] sm:$0xff] %v4478_v5 }
 0x4ad PF: > { %s27_s11 = sadd.s32 1, %s5592_s11   ;;  %s6706_s17 = sld [smem:[#allocation19_spill]] }
 0x4ae   : > { %p24_p8 = scmp.ge.s32.totalorder %s27_s11, 6   ;;  %s6707_s26 = sld [smem:[#allocation27_spill]] }
 0x4af   : > { %s6708_s1 = sld [smem:[#allocation20_spill]]  ;;  %s6709_s29 = sld [smem:[#allocation26_spill]] }
 0x4b0   : > { %s6710_s30 = sld [smem:[#allocation23_spill]]  ;;  %s6711_s9 = sld [smem:[#allocation24_spill]] }
 0x4b1   : > { %s6712_s20 = sld [smem:[#allocation25_spill]]  ;;  %s6713_s24 = smov %s5556_s25 }
 0x4b2   : > { %s6715_s27 = smov %s5568_s28  ;;  %s6717_s8 = smov %s5588_s10 }
 0x4b3   : > { %s6714_s25 = smov %s6706_s17  ;;  %26 = sbr.rel (!%p24_p8) target bundleno = 17 (0x11), region = 161 }
 0x4b5   : > { %s6716_s28 = smov %s6708_s1 }
 0x4b7   : > { %s6718_s10 = smov %s6712_s20 }
 0x4ba   :  { %3798 = vsyncpa [#allocation4], 1 }
 0x4bb   :  { %3800 = vsyncpa [#allocation4 + $0x1], 1 }
 0x4bc   :  { %3801 = vsyncpa [#allocation6], 1 }
 0x4bd   :  { %3803 = vsyncpa [#allocation6 + $0x1], 1 }
 0x4be   :  { %3804 = vsyncpa [#allocation9], 1 }
 0x4bf   :  { %3806 = vsyncpa [#allocation9 + $0x1], 1 }
 0x4c0   :  { %3807 = vsyncpa [#allocation12], 1 }
 0x4c1   :  { %3809 = vsyncpa [#allocation12 + $0x1], 1 }

</bundles_post_ra>
